<compile_context>
chip_gen: v5e
topology: v5e:2x2
jax: 0.10.0
libtpu: 0.0.40
codegen_flags: <defaults>
</compile_context>

<pallas_src>
import jax
import jax.numpy as jnp
from jax.experimental import pallas as pl
from jax.experimental.pallas import tpu as pltpu


def _round_up(a, b):
    return -(-a // b) * b


def eeg_kernel(cols1_ref, w1_ref, b1_ref, w2_ref, b2_ref, wfc_ref, out_ref, hpad_ref):
    TN, L, _ = cols1_ref.shape
    Lp = L // 2

    # ---- Conv1d(Cin->32, k=5, pad=2), BN folded into w1/b1: one GEMM on the
    #      pre-im2col'd tile (im2col/pad/cast hoisted to the wrapper). ----
    h = jnp.einsum('nlk,ko->nlo', cols1_ref[...], w1_ref[...],
                   preferred_element_type=jnp.float32)                 # (TN, L, 32) f32

    # ---- MaxPool1d(2) first (exactly commutes with the constant per-channel
    #      shift + monotone ReLU), then (conv bias + BN shift) + ReLU. ----
    hpair = h[:, :2 * Lp, :].reshape(TN, Lp, 2, 32)
    hp = jnp.maximum(hpair[:, :, 0, :], hpair[:, :, 1, :])             # (TN, Lp, 32)
    hp = jnp.maximum(hp + b1_ref[...].reshape(1, 1, 32), 0.0)
    hp16 = hp.astype(jnp.bfloat16)

    # ---- Conv1d(32->128, k=3, pad=1), BN folded: per-tap GEMMs from a
    #      zero-edged persistent VMEM scratch (no im2col lane-concat and no
    #      full-tensor zero-pad concat). ----
    hpad_ref[:, 0:1, :] = jnp.zeros((TN, 1, 32), jnp.bfloat16)
    hpad_ref[:, Lp + 1:Lp + 2, :] = jnp.zeros((TN, 1, 32), jnp.bfloat16)
    hpad_ref[:, 1:Lp + 1, :] = hp16
    g = jnp.einsum('nlk,ko->nlo', hp16, w2_ref[1],
                   preferred_element_type=jnp.float32)                 # center tap
    g = g + jnp.einsum('nlk,ko->nlo', hpad_ref[:, 0:Lp, :], w2_ref[0],
                       preferred_element_type=jnp.float32)             # left tap
    g = g + jnp.einsum('nlk,ko->nlo', hpad_ref[:, 2:Lp + 2, :], w2_ref[2],
                       preferred_element_type=jnp.float32)             # right tap
    g = jnp.maximum(g + b2_ref[...].reshape(1, 1, 128), 0.0)           # (TN, Lp, 128)

    # ---- AdaptiveAvgPool1d(1) (1/Lp folded into wfc) + Flatten + Dropout(eval)
    #      + Linear(128,1) as VPU multiply + lane reduction (no M=1 MXU GEMM). ----
    gsum = jnp.sum(g, axis=1)                                          # (TN, 128)
    res = jnp.sum(gsum * wfc_ref[...], axis=1)                         # (TN,)
    out_ref[...] = res.reshape(1, 1, TN)


def _vmem_limit_bytes():
    try:
        cap = int(getattr(pltpu.get_tpu_info(), "vmem_capacity_bytes", 128 * 1024 * 1024))
    except Exception:
        cap = 128 * 1024 * 1024
    if cap <= 64 * 1024 * 1024:        # v7x-class part (64 MiB / TC): leave headroom
        return 26 * 1024 * 1024
    return 64 * 1024 * 1024            # v5e / v6e (128 MiB physical)


def eeg_classifier(x_ncl, params):
    """x_ncl: (N, C, L) like PyTorch; returns (N,) like .squeeze(1). Eval-mode semantics."""
    N, Cin, L = x_ncl.shape
    Lp = L // 2
    K1 = 5 * Cin

    # Wrapper-side (one fused XLA pass): NLC transpose, conv1 zero-padding,
    # conv1 im2col, bf16 cast -> the DMA'd tile needs no in-kernel relayouts.
    x = jnp.transpose(x_ncl, (0, 2, 1)).astype(jnp.float32)            # (N, L, Cin)
    xp = jnp.pad(x, ((0, 0), (2, 2), (0, 0)))
    cols1 = jnp.concatenate([xp[:, k:k + L, :] for k in range(5)],
                            axis=-1).astype(jnp.bfloat16)              # (N, L, 5*Cin)

    # Fold eval-mode BatchNorm into conv weights/biases; fold avg-pool 1/Lp into FC weight.
    w1f = (params['w1'] * params['s1'].reshape(1, 1, 32)).reshape(K1, 32).astype(jnp.bfloat16)
    b1f = (params['b1'] * params['s1'] + params['t1']).reshape(1, 32).astype(jnp.float32)
    w2f = (params['w2'] * params['s2'].reshape(1, 1, 128)).astype(jnp.bfloat16)   # (3, 32, 128)
    b2f = (params['b2'] * params['s2'] + params['t2']).reshape(1, 128).astype(jnp.float32)
    wfcf = (params['wfc'][:, 0] / Lp).reshape(1, 128).astype(jnp.float32)

    # ---- Batch-tile sizing from a layout-aware VMEM model ((8/16, 128) padding). ----
    vmem_limit = _vmem_limit_bytes()
    K1p = _round_up(K1, 128)
    Ls16, Ls8 = _round_up(L, 16), _round_up(L, 8)
    Lp8 = _round_up(max(Lp, 1), 8)
    Lp2_16 = _round_up(Lp + 2, 16)
    per_sample = (
        2 * Ls16 * K1p * 2        # pipelined cols1 tile (bf16, double-buffered)
        + Ls8 * 128 * 4           # conv1 output h (f32, 32 -> 128 lane padding)
        + Lp8 * 128 * 4           # pooled / ReLU'd hp (f32)
        + 2 * Lp2_16 * 128 * 2    # hp16 value + zero-edged scratch (bf16)
        + Lp2_16 * 128 * 2        # transient per-tap operand slice (bf16)
        + Lp8 * 128 * 4           # conv2 f32 accumulator g
    )
    fixed = 512 * 1024            # resident weights/biases, output buffers, misc
    budget = int(0.75 * vmem_limit) - fixed
    tn_vmem = max(8, (budget // per_sample) // 8 * 8)
    tn_two_steps = max(8, _round_up(-(-N // 2), 8))   # >= 2 grid steps -> both v7x TCs busy
    TN = int(min(tn_vmem, tn_two_steps, _round_up(N, 8)))
    # TODO(synk): for very long L the per-sample footprint can exceed the budget even at
    # TN=8; a (batch, time) 2-D grid with a 4-sample conv1 halo and a pl.when time
    # accumulator would be needed there (mainly relevant on v7x's 64 MiB VMEM).
    G = -(-N // TN)
    Np = G * TN
    if Np != N:
        cols1 = jnp.pad(cols1, ((0, Np - N), (0, 0), (0, 0)))

    flops = int(Np * (2 * L * K1 * 32 + 2 * Lp * 96 * 128 + 4 * Lp * 128 + 2 * 128))
    bytes_accessed = int(cols1.size * 2 + (w1f.size + w2f.size) * 2
                         + (b1f.size + b2f.size + wfcf.size) * 4 + Np * 4)

    out = pl.pallas_call(
        eeg_kernel,
        out_shape=jax.ShapeDtypeStruct((G, 1, TN), jnp.float32),
        grid=(G,),
        in_specs=[
            pl.BlockSpec((TN, L, K1), lambda i: (i, 0, 0)),        # pipelined batch tile
            pl.BlockSpec(memory_space=pltpu.MemorySpace.VMEM),     # w1 (BN-folded, bf16)
            pl.BlockSpec(memory_space=pltpu.MemorySpace.VMEM),     # b1 (BN-folded)
            pl.BlockSpec(memory_space=pltpu.MemorySpace.VMEM),     # w2 (3,32,128) bf16
            pl.BlockSpec(memory_space=pltpu.MemorySpace.VMEM),     # b2 (BN-folded)
            pl.BlockSpec(memory_space=pltpu.MemorySpace.VMEM),     # fc weight / Lp
        ],
        out_specs=pl.BlockSpec((1, 1, TN), lambda i: (i, 0, 0)),
        scratch_shapes=[pltpu.VMEM((TN, Lp + 2, 32), jnp.bfloat16)],
        compiler_params=pltpu.CompilerParams(
            dimension_semantics=("parallel",),
            vmem_limit_bytes=vmem_limit),
        cost_estimate=pl.CostEstimate(flops=flops, transcendentals=0,
                                      bytes_accessed=bytes_accessed),
    )(cols1, w1f, b1f, w2f, b2f, wfcf)

    # Final Linear bias folded here (drops the SMEM scalar operand from the kernel).
    return out.reshape(Np)[:N] + params['bfc'][0, 0]


def reference_forward(x_ncl, params):
    """Plain-JAX, f32, PyTorch-ordered eval-mode math (validates all the folding)."""
    x = jnp.transpose(x_ncl, (0, 2, 1)).astype(jnp.float32)
    N, L, Cin = x.shape
    xp = jnp.pad(x, ((0, 0), (2, 2), (0, 0)))
    h = sum(jnp.einsum('nlc,co->nlo', xp[:, k:k + L, :], params['w1'][k]) for k in range(5))
    h = h + params['b1'].reshape(1, 1, 32)
    h = jnp.maximum(h * params['s1'].reshape(1, 1, 32) + params['t1'].reshape(1, 1, 32), 0.0)
    Lp = L // 2
    hp = jnp.max(h[:, :2 * Lp, :].reshape(N, Lp, 2, 32), axis=2)
    hpp = jnp.pad(hp, ((0, 0), (1, 1), (0, 0)))
    g = sum(jnp.einsum('nlc,co->nlo', hpp[:, k:k + Lp, :], params['w2'][k]) for k in range(3))
    g = g + params['b2'].reshape(1, 1, 128)
    g = jnp.maximum(g * params['s2'].reshape(1, 1, 128) + params['t2'].reshape(1, 1, 128), 0.0)
    pooled = jnp.mean(g, axis=1)
    return (pooled @ params['wfc'] + params['bfc'])[:, 0]


def make_params(key, num_channels):
    ks = jax.random.split(key, 12)
    eps = 1e-5

    def bn_fold(kg, kb, km, kv, c):
        gamma = 1.0 + 0.1 * jax.random.normal(kg, (1, c), jnp.float32)
        beta = 0.1 * jax.random.normal(kb, (1, c), jnp.float32)
        mean = 0.1 * jax.random.normal(km, (1, c), jnp.float32)
        var = jnp.abs(jax.random.normal(kv, (1, c), jnp.float32)) + 0.5
        scale = gamma / jnp.sqrt(var + eps)
        shift = beta - mean * scale
        return scale, shift

    s1, t1 = bn_fold(ks[2], ks[3], ks[4], ks[5], 32)
    s2, t2 = bn_fold(ks[8], ks[9], ks[10], ks[11], 128)
    # Conv weights stored as (K, C_in, C_out) == PyTorch (out, in, k) transposed.
    return {
        'w1': 0.1 * jax.random.normal(ks[0], (5, num_channels, 32), jnp.float32),
        'b1': 0.1 * jax.random.normal(ks[1], (1, 32), jnp.float32),
        's1': s1, 't1': t1,
        'w2': 0.1 * jax.random.normal(ks[6], (3, 32, 128), jnp.float32),
        'b2': 0.1 * jax.random.normal(ks[7], (1, 128), jnp.float32),
        's2': s2, 't2': t2,
        'wfc': 0.1 * jax.random.normal(jax.random.fold_in(key, 100), (128, 1), jnp.float32),
        'bfc': 0.1 * jax.random.normal(jax.random.fold_in(key, 101), (1, 1), jnp.float32),
    }


if __name__ == "__main__":
    key = jax.random.PRNGKey(0)
    k_x, k_p = jax.random.split(key)

    N, C, L = 2, 4, 16                     # batch, EEG channels, sequence length
    x = jax.random.normal(k_x, (N, C, L), jnp.float32)
    params = make_params(k_p, C)

    y = jax.block_until_ready(eeg_classifier(x, params))
    y_ref = jax.block_until_ready(reference_forward(x, params))

    assert y.shape == (N,)
    # bf16 MXU operands in the kernel vs f32 reference -> loose-ish tolerance.
    assert jnp.allclose(y, y_ref, atol=2e-2, rtol=2e-2), (y, y_ref)
    print("KERNEL_OK")
</pallas_src>

<mosaic_0001>
module attributes {stable_mosaic.version = 11 : i64} {
  func.func @eeg_kernel(%arg0: i32, %arg1: memref<8x16x20xbf16, #tpu.memory_space<vmem>>, %arg2: memref<20x32xbf16, #tpu.memory_space<vmem>>, %arg3: memref<1x32xf32, #tpu.memory_space<vmem>>, %arg4: memref<3x32x128xbf16, #tpu.memory_space<vmem>>, %arg5: memref<1x128xf32, #tpu.memory_space<vmem>>, %arg6: memref<1x128xf32, #tpu.memory_space<vmem>>, %arg7: memref<1x1x8xf32, #tpu.memory_space<vmem>>, %arg8: memref<8x10x32xbf16, #tpu.memory_space<vmem>>) attributes {dimension_semantics = [#tpu.dimension_semantics<parallel>], iteration_bounds = array<i64: 1>, scalar_prefetch = 0 : i64, scratch_operands = 1 : i64, tpu.core_type = #tpu.core_type<tc>, window_params = [{transform_indices = @transform_0, window_bounds = array<i64: 8, 16, 20>}, {pipeline_mode = #tpu.pipeline_mode<synchronous>, transform_indices = @transform_1, window_bounds = array<i64: 20, 32>}, {pipeline_mode = #tpu.pipeline_mode<synchronous>, transform_indices = @transform_2, window_bounds = array<i64: 1, 32>}, {pipeline_mode = #tpu.pipeline_mode<synchronous>, transform_indices = @transform_3, window_bounds = array<i64: 3, 32, 128>}, {pipeline_mode = #tpu.pipeline_mode<synchronous>, transform_indices = @transform_4, window_bounds = array<i64: 1, 128>}, {pipeline_mode = #tpu.pipeline_mode<synchronous>, transform_indices = @transform_5, window_bounds = array<i64: 1, 128>}, {transform_indices = @transform_6, window_bounds = array<i64: 1, 1, 8>}]} {
    %c0 = arith.constant 0 : index
    %c0_0 = arith.constant 0 : index
    %c0_1 = arith.constant 0 : index
    %0 = vector.load %arg1[%c0, %c0_0, %c0_1] : memref<8x16x20xbf16, #tpu.memory_space<vmem>>, vector<8x16x20xbf16>
    %c0_2 = arith.constant 0 : index
    %c0_3 = arith.constant 0 : index
    %1 = vector.load %arg2[%c0_2, %c0_3] : memref<20x32xbf16, #tpu.memory_space<vmem>>, vector<20x32xbf16>
    "tpu.trace_start"() <{level = 10 : i32, message = "nlk,ko->nlo"}> : () -> ()
    %cst = arith.constant dense<0.000000e+00> : vector<8x16x32xf32>
    %2 = tpu.matmul %0, %1, %cst {dimension_numbers = #tpu.dot_dimension_numbers<[2], [0], [0, 1], [1], [0, 0, 0, 1, 1, 1], [], []>} : vector<8x16x20xbf16>, vector<20x32xbf16>, vector<8x16x32xf32> -> vector<8x16x32xf32>
    "tpu.trace_stop"() : () -> ()
    %3 = vector.shape_cast %2 : vector<8x16x32xf32> to vector<8x8x2x32xf32>
    %4 = vector.extract_strided_slice %3 {offsets = [0, 0, 0, 0], sizes = [8, 8, 1, 32], strides = [1, 1, 1, 1]} : vector<8x8x2x32xf32> to vector<8x8x1x32xf32>
    %5 = vector.shape_cast %4 : vector<8x8x1x32xf32> to vector<8x8x32xf32>
    %6 = vector.extract_strided_slice %3 {offsets = [0, 0, 1, 0], sizes = [8, 8, 1, 32], strides = [1, 1, 1, 1]} : vector<8x8x2x32xf32> to vector<8x8x1x32xf32>
    %7 = vector.shape_cast %6 : vector<8x8x1x32xf32> to vector<8x8x32xf32>
    %8 = arith.maximumf %5, %7 : vector<8x8x32xf32>
    %c0_4 = arith.constant 0 : index
    %c0_5 = arith.constant 0 : index
    %9 = vector.load %arg3[%c0_4, %c0_5] : memref<1x32xf32, #tpu.memory_space<vmem>>, vector<1x32xf32>
    %10 = vector.shape_cast %9 : vector<1x32xf32> to vector<1x1x32xf32>
    %11 = vector.broadcast %10 : vector<1x1x32xf32> to vector<8x8x32xf32>
    %12 = arith.addf %8, %11 : vector<8x8x32xf32>
    %cst_6 = arith.constant 0.000000e+00 : f32
    %13 = vector.broadcast %cst_6 : f32 to vector<8x8x32xf32>
    %14 = arith.maximumf %12, %13 : vector<8x8x32xf32>
    %15 = arith.truncf %14 : vector<8x8x32xf32> to vector<8x8x32xbf16>
    %cst_7 = arith.constant 0.000000e+00 : bf16
    %16 = vector.broadcast %cst_7 : bf16 to vector<8x1x32xbf16>
    %c0_8 = arith.constant 0 : index
    %c0_9 = arith.constant 0 : index
    %c0_10 = arith.constant 0 : index
    %17 = vector.load %arg8[%c0_8, %c0_9, %c0_10] : memref<8x10x32xbf16, #tpu.memory_space<vmem>>, vector<8x1x32xbf16>
    tpu.vector_store %arg8[%c0_8, %c0_9, %c0_10], %16 {strides = array<i32>} : memref<8x10x32xbf16, #tpu.memory_space<vmem>>, vector<8x1x32xbf16>,
    %cst_11 = arith.constant 0.000000e+00 : bf16
    %18 = vector.broadcast %cst_11 : bf16 to vector<8x1x32xbf16>
    %c0_12 = arith.constant 0 : index
    %c9 = arith.constant 9 : index
    %c0_13 = arith.constant 0 : index
    %19 = vector.load %arg8[%c0_12, %c9, %c0_13] : memref<8x10x32xbf16, #tpu.memory_space<vmem>>, vector<8x1x32xbf16>
    tpu.vector_store %arg8[%c0_12, %c9, %c0_13], %18 {strides = array<i32>} : memref<8x10x32xbf16, #tpu.memory_space<vmem>>, vector<8x1x32xbf16>,
    %c0_14 = arith.constant 0 : index
    %c1 = arith.constant 1 : index
    %c0_15 = arith.constant 0 : index
    %20 = vector.load %arg8[%c0_14, %c1, %c0_15] : memref<8x10x32xbf16, #tpu.memory_space<vmem>>, vector<8x8x32xbf16>
    tpu.vector_store %arg8[%c0_14, %c1, %c0_15], %15 {strides = array<i32>} : memref<8x10x32xbf16, #tpu.memory_space<vmem>>, vector<8x8x32xbf16>,
    %c1_16 = arith.constant 1 : index
    %c0_17 = arith.constant 0 : index
    %c0_18 = arith.constant 0 : index
    %21 = vector.load %arg4[%c1_16, %c0_17, %c0_18] : memref<3x32x128xbf16, #tpu.memory_space<vmem>>, vector<1x32x128xbf16>
    %22 = vector.shape_cast %21 : vector<1x32x128xbf16> to vector<32x128xbf16>
    "tpu.trace_start"() <{level = 10 : i32, message = "nlk,ko->nlo"}> : () -> ()
    %cst_19 = arith.constant dense<0.000000e+00> : vector<8x8x128xf32>
    %23 = tpu.matmul %15, %22, %cst_19 {dimension_numbers = #tpu.dot_dimension_numbers<[2], [0], [0, 1], [1], [0, 0, 0, 1, 1, 1], [], []>} : vector<8x8x32xbf16>, vector<32x128xbf16>, vector<8x8x128xf32> -> vector<8x8x128xf32>
    "tpu.trace_stop"() : () -> ()
    %c0_20 = arith.constant 0 : index
    %c0_21 = arith.constant 0 : index
    %c0_22 = arith.constant 0 : index
    %24 = vector.load %arg8[%c0_20, %c0_21, %c0_22] : memref<8x10x32xbf16, #tpu.memory_space<vmem>>, vector<8x8x32xbf16>
    %c0_23 = arith.constant 0 : index
    %c0_24 = arith.constant 0 : index
    %c0_25 = arith.constant 0 : index
    %25 = vector.load %arg4[%c0_23, %c0_24, %c0_25] : memref<3x32x128xbf16, #tpu.memory_space<vmem>>, vector<1x32x128xbf16>
    %26 = vector.shape_cast %25 : vector<1x32x128xbf16> to vector<32x128xbf16>
    "tpu.trace_start"() <{level = 10 : i32, message = "nlk,ko->nlo"}> : () -> ()
    %cst_26 = arith.constant dense<0.000000e+00> : vector<8x8x128xf32>
    %27 = tpu.matmul %24, %26, %cst_26 {dimension_numbers = #tpu.dot_dimension_numbers<[2], [0], [0, 1], [1], [0, 0, 0, 1, 1, 1], [], []>} : vector<8x8x32xbf16>, vector<32x128xbf16>, vector<8x8x128xf32> -> vector<8x8x128xf32>
    "tpu.trace_stop"() : () -> ()
    %28 = arith.addf %23, %27 : vector<8x8x128xf32>
    %c0_27 = arith.constant 0 : index
    %c2 = arith.constant 2 : index
    %c0_28 = arith.constant 0 : index
    %29 = vector.load %arg8[%c0_27, %c2, %c0_28] : memref<8x10x32xbf16, #tpu.memory_space<vmem>>, vector<8x8x32xbf16>
    %c2_29 = arith.constant 2 : index
    %c0_30 = arith.constant 0 : index
    %c0_31 = arith.constant 0 : index
    %30 = vector.load %arg4[%c2_29, %c0_30, %c0_31] : memref<3x32x128xbf16, #tpu.memory_space<vmem>>, vector<1x32x128xbf16>
    %31 = vector.shape_cast %30 : vector<1x32x128xbf16> to vector<32x128xbf16>
    "tpu.trace_start"() <{level = 10 : i32, message = "nlk,ko->nlo"}> : () -> ()
    %cst_32 = arith.constant dense<0.000000e+00> : vector<8x8x128xf32>
    %32 = tpu.matmul %29, %31, %cst_32 {dimension_numbers = #tpu.dot_dimension_numbers<[2], [0], [0, 1], [1], [0, 0, 0, 1, 1, 1], [], []>} : vector<8x8x32xbf16>, vector<32x128xbf16>, vector<8x8x128xf32> -> vector<8x8x128xf32>
    "tpu.trace_stop"() : () -> ()
    %33 = arith.addf %28, %32 : vector<8x8x128xf32>
    %c0_33 = arith.constant 0 : index
    %c0_34 = arith.constant 0 : index
    %34 = vector.load %arg5[%c0_33, %c0_34] : memref<1x128xf32, #tpu.memory_space<vmem>>, vector<1x128xf32>
    %35 = vector.shape_cast %34 : vector<1x128xf32> to vector<1x1x128xf32>
    %36 = vector.broadcast %35 : vector<1x1x128xf32> to vector<8x8x128xf32>
    %37 = arith.addf %33, %36 : vector<8x8x128xf32>
    %cst_35 = arith.constant 0.000000e+00 : f32
    %38 = vector.broadcast %cst_35 : f32 to vector<8x8x128xf32>
    %39 = arith.maximumf %37, %38 : vector<8x8x128xf32>
    %cst_36 = arith.constant dense<0.000000e+00> : vector<8x128xf32>
    %40 = vector.multi_reduction <add>, %39, %cst_36 [1] : vector<8x8x128xf32> to vector<8x128xf32>
    %c0_37 = arith.constant 0 : index
    %c0_38 = arith.constant 0 : index
    %41 = vector.load %arg6[%c0_37, %c0_38] : memref<1x128xf32, #tpu.memory_space<vmem>>, vector<1x128xf32>
    %42 = vector.broadcast %41 : vector<1x128xf32> to vector<8x128xf32>
    %43 = arith.mulf %40, %42 : vector<8x128xf32>
    %cst_39 = arith.constant dense<0.000000e+00> : vector<8xf32>
    %44 = vector.multi_reduction <add>, %43, %cst_39 [1] : vector<8x128xf32> to vector<8xf32>
    %45 = vector.shape_cast %44 : vector<8xf32> to vector<1x1x8xf32>
    %c0_40 = arith.constant 0 : index
    %c0_41 = arith.constant 0 : index
    %c0_42 = arith.constant 0 : index
    %46 = vector.load %arg7[%c0_40, %c0_41, %c0_42] : memref<1x1x8xf32, #tpu.memory_space<vmem>>, vector<1x1x8xf32>
    tpu.vector_store %arg7[%c0_40, %c0_41, %c0_42], %45 {strides = array<i32>} : memref<1x1x8xf32, #tpu.memory_space<vmem>>, vector<1x1x8xf32>,
    return
  }
  func.func @transform_0(%arg0: i32) -> (i32, i32, i32) {
    %c0_i32 = arith.constant 0 : i32
    %c0_i32_0 = arith.constant 0 : i32
    %c0_i32_1 = arith.constant 0 : i32
    return %arg0, %c0_i32, %c0_i32_0 : i32, i32, i32
  }
  func.func @transform_1(%arg0: i32) -> (i32, i32) {
    %c0_i32 = arith.constant 0 : i32
    %c0_i32_0 = arith.constant 0 : i32
    %c0_i32_1 = arith.constant 0 : i32
    return %c0_i32, %c0_i32_0 : i32, i32
  }
  func.func @transform_2(%arg0: i32) -> (i32, i32) {
    %c0_i32 = arith.constant 0 : i32
    %c0_i32_0 = arith.constant 0 : i32
    %c0_i32_1 = arith.constant 0 : i32
    return %c0_i32, %c0_i32_0 : i32, i32
  }
  func.func @transform_3(%arg0: i32) -> (i32, i32, i32) {
    %c0_i32 = arith.constant 0 : i32
    %c0_i32_0 = arith.constant 0 : i32
    %c0_i32_1 = arith.constant 0 : i32
    %c0_i32_2 = arith.constant 0 : i32
    return %c0_i32, %c0_i32_0, %c0_i32_1 : i32, i32, i32
  }
  func.func @transform_4(%arg0: i32) -> (i32, i32) {
    %c0_i32 = arith.constant 0 : i32
    %c0_i32_0 = arith.constant 0 : i32
    %c0_i32_1 = arith.constant 0 : i32
    return %c0_i32, %c0_i32_0 : i32, i32
  }
  func.func @transform_5(%arg0: i32) -> (i32, i32) {
    %c0_i32 = arith.constant 0 : i32
    %c0_i32_0 = arith.constant 0 : i32
    %c0_i32_1 = arith.constant 0 : i32
    return %c0_i32, %c0_i32_0 : i32, i32
  }
  func.func @transform_6(%arg0: i32) -> (i32, i32, i32) {
    %c0_i32 = arith.constant 0 : i32
    %c0_i32_0 = arith.constant 0 : i32
    %c0_i32_1 = arith.constant 0 : i32
    return %arg0, %c0_i32, %c0_i32_0 : i32, i32, i32
  }
}

</mosaic_0001>

<bundles_post_ra>
// kernel: tpu_custom_call.1
= control target key start
LH: loop header
LB: loop body
LE: loop exit
PB: predicated region body
PF: predicated region fallthrough
CT: control target
= control target key end

     0   :  { %11 = vsyncpa [#allocation4], 0  ;;  %s3100_s0 = inlined_call_operand.hbm [shape: bf16[8,16,20], index: 0, kind: input, shape index: {}]   ;;  %s3101_s1 = inlined_call_operand.hbm [shape: bf16[20,32], index: 1, kind: input, shape index: {}]   ;;  %s3102_s2 = inlined_call_operand.vmem [shape: f32[1,32], index: 2, kind: input, shape index: {}]   ;;  %s3103_s3 = inlined_call_operand.hbm [shape: bf16[3,32,128], index: 3, kind: input, shape index: {}]   ;;  %s3104_s4 = inlined_call_operand.vmem [shape: f32[1,128], index: 4, kind: input, shape index: {}]   ;;  %s3105_s5 = inlined_call_operand.vmem [shape: f32[1,128], index: 5, kind: input, shape index: {}]   ;;  %s3106_s6 = inlined_call_operand.hbm [shape: f32[1,1,8], index: 6, kind: output, shape index: {}]  }
   0x1   :  { %12 = vsyncpa [#allocation7], 0 }
   0x2   :  { %13 = vsyncpa [#allocation5], 0  ;;  %s31_s23 = sshll.u32 %s3101_s1, 4  ;;  %s2194_s24 = smov [#allocation6]   ;;  %s32_s23 = int_to_ptr.hbm [resolvable:$true] %s31_s23 }
   0x3   :  { %s33_s25 = sshll.u32 %s2194_s24, 4  ;;  %s18_s28 = sshll.u32 %s3100_s0, 4  ;;  %s34_s25 = int_to_ptr.vmem [resolvable:$true] %s33_s25  ;;  %s19_s28 = int_to_ptr.hbm [resolvable:$true] %s18_s28 }
   0x4   :  { %s2195_s29 = smov 64   ;;  %s2196_s30 = smov 4  }
   0x5   :  { %39 = dma.hbm_to_vmem [thread:$0]  %s32_s23, 192, %s34_s25, [#allocation7], %s2195_s29, %s2195_s29, %s2196_s30  }
   0x6   :  { %s2197_s7 = smov [#allocation3]   ;;  %s46_s11 = sshll.u32 %s3103_s3, 4  ;;  %s47_s11 = int_to_ptr.hbm [resolvable:$true] %s46_s11 }
   0x7   :  { %s20_s8 = sshll.u32 %s2197_s7, 4  ;;  %s2198_s1 = smov [#allocation8]   ;;  %s21_s8 = int_to_ptr.vmem [resolvable:$true] %s20_s8 }
   0x8   :  { %26 = dma.hbm_to_vmem [thread:$0]  %s19_s28, 1024, %s21_s8, [#allocation4], %s2195_s29, %s2195_s29, %s2196_s30  }
   0x9   :  { %s48_s12 = sshll.u32 %s2198_s1, 4  ;;  %s49_s12 = int_to_ptr.vmem [resolvable:$true] %s48_s12 }
   0xa   :  { %54 = dma.hbm_to_vmem [thread:$0]  %s47_s11, 768, %s49_s12, [#allocation7], %s2195_s29, %s2195_s29, %s2196_s30  }
   0xb   :  { %2188 = dma.done.wait [#allocation4], 1024  }
   0xc   :  { %2189 = vsyncadd [#allocation4], 4294966272 }
   0xd   :  { %2190 = dma.done.wait [#allocation7], 960  }
   0xe   :  { %2191 = vsyncadd [#allocation7], 4294966336  ;;  %v90_v0 = vld [vmem:[#allocation6 + $0x8] sm:$0x3]  ;;  %vm165_vm0 = vcmask 1041408   ;;  %v2065_v4 = vld [vmem:[#allocation6] sm:$0xff] }
   0xf   :  { %v136_v1 = vunpack.c.l.b16 %v90_v0  ;;  %v2057_v5 = vld [vmem:[#allocation3] sm:$0xff]  ;;  %vm140_vm1 = vcmask 162816   ;;  %v2058_v6 = vld [vmem:[#allocation3 + $0x8] sm:$0xff]  ;;  %v2063_v8 = vld [vmem:[#allocation3 + $0x30] sm:$0xff]  ;;  %vm796_vm2 = vcmask 253952   ;;  %vm979_vm7 = vcmask 1042434  }
  0x10   :  { %v2062_v7 = vld [vmem:[#allocation3 + $0x28] sm:$0xff]  ;;  %v2064_v9 = vld [vmem:[#allocation3 + $0x38] sm:$0xff]  ;;  %v2059_v10 = vld [vmem:[#allocation3 + $0x10] sm:$0xff]  ;;  %vm823_vm3 = vsmask.f32 7938  ;;  %vm982_vm8 = vcmask 1043459  }
  0x11   :  { %v138_v2 = vpack.c.b16 %v136_v1, %v136_v1  ;;  %v2060_v11 = vld [vmem:[#allocation3 + $0x18] sm:$0xff]  ;;  %v2061_v12 = vld [vmem:[#allocation3 + $0x20] sm:$0xff]  ;;  %vm2253_vm4 = vmand %vm796_vm2, %vm823_vm3  ;;  %vm797_vm5 = vsmask.f32 256  ;;  %vm985_vm9 = vcmask 1044484   ;;  %vm988_vm10 = vcmask 1045509  }
  0x12   :  { %v825_v14 = vld [vmem:[#allocation2 + $0x4] sm:$0x1]  ;;  %vm2259_vm6 = vmand %vm796_vm2, %vm797_vm5  ;;  %v799_v17 = vld [vmem:[#allocation2] sm:$0x1]  ;;  %vm991_vm11 = vcmask 1046534   ;;  %vm994_vm12 = vcmask 1047559  }
  0x13   :  { %v167_v3 = vsel %vm165_vm0, %v138_v2, 0  ;;  %v826_v15 = vsel %vm2253_vm4, 0, %v825_v14  ;;  %v800_v18 = vsel %vm2259_vm6, 0, %v799_v17  ;;  %v2268_v19 = vld [vmem:[%s3102_s2] ss:$0 sm:$0xff]  ;;  %vm1119_vm13 = vcmask 257024  }
  0x14   :  { %175 = vmatpush.bf16.msra.mxu0 %v167_v3  ;;  %2076 = vmatpush.bf16.msra.mxu1 %v167_v3  ;;  %827 = vst [vmem:[#allocation2 + $0x4] sm:$0x1] %v826_v15  ;;  %v2271_v20 = vrot.slane %v2268_v19, 2  ;;  %v2274_v26 = vrot.slane %v2268_v19, 1  ;;  %v2280_v32 = vrot.slane %v2268_v19, 4  ;;  %v2287_v42 = vrot.slane %v2268_v19, 6  ;;  %vm2346_vm15 = vmand %vm1119_vm13, %vm823_vm3 }
  0x15   :  { %2077 = vmatpush.bf16.msra.mxu2 %v167_v3  ;;  %2078 = vmatpush.bf16.msra.mxu3 %v167_v3  ;;  %801 = vst [vmem:[#allocation2] sm:$0x1] %v800_v18  ;;  %vm1381_vm14 = vcmask 1041409   ;;  %vm1218_vm0 = vcmask 261120   ;;  %vm1588_vm2 = vcmask 1046532   ;;  %s1814_s20 = sshll.u32 %s3106_s6, 4  ;;  %s1815_s20 = int_to_ptr.hbm [resolvable:$true] %s1814_s20 }
  0x16   :  { %v2277_v27 = vrot.slane %v2271_v20, 1  ;;  %v2290_v43 = vrot.slane %v2280_v32, 1  ;;  %v2304_v62 = vrot.slane %v2287_v42, 1 }
  0x18   :  { %176 = vmatpush.bf16.msra.mxu0 %v2065_v4  ;;  %2079 = vmatpush.bf16.msra.mxu1 %v2065_v4 }
  0x19   :  { %2080 = vmatpush.bf16.msra.mxu2 %v2065_v4  ;;  %2081 = vmatpush.bf16.msra.mxu3 %v2065_v4 }
  0x1b   :  { %1861 = vmatmul.msk.bf16.vlgmr.msra.gmra.mxu0 %vm140_vm1, %v2057_v5  ;;  %1866 = vmatmul.msk.bf16.vlgmr.msra.gmra.mxu1 %vm140_vm1, %v2062_v7 }
  0x1c   :  { %1867 = vmatmul.msk.bf16.vlgmr.msra.gmra.mxu2 %vm140_vm1, %v2063_v8  ;;  %1868 = vmatmul.msk.bf16.vlgmr.msra.gmra.mxu3 %vm140_vm1, %v2064_v9 }
  0x2b   :  { %1862 = vmatmul.msk.bf16.gmra.mxu0 %vm140_vm1, %v2058_v6 }
  0x3b   :  { %1863 = vmatmul.msk.bf16.gmra.mxu0 %vm140_vm1, %v2059_v10 }
  0x4b   :  { %1864 = vmatmul.msk.bf16.gmra.mxu0 %vm140_vm1, %v2060_v11 }
  0x5b   :  { %1865 = vmatmul.msk.bf16.gmra.mxu0 %vm140_vm1, %v2061_v12  ;;  %vm1587_vm1 = vcmask 1042432  }
  0x5c   :  { %vm2665_vm3 = vmor %vm1587_vm1, %vm1588_vm2 }
  0x98   :  { %v178_v21 = vpop.f32.mrf.mxu0 }
  0x99   :  { %v234_v22 = vrot.slane %v178_v21, 2  ;;  %v235_v23 = vrot.slane %v178_v21, 4  ;;  %v236_v24 = vrot.slane %v178_v21, 6  ;;  %v1869_v25 = vrot.slane %v178_v21, 9 }
  0x9b   :  { %v1870_v28 = vrot.slane %v234_v22, 9  ;;  %v1871_v29 = vrot.slane %v235_v23, 9  ;;  %v1872_v30 = vrot.slane %v236_v24, 9  ;;  %v522_v31 = vmax.f32 %v178_v21, %v1869_v25 }
  0x9d   :  { %v523_v33 = vmax.f32 %v234_v22, %v1870_v28  ;;  %v524_v34 = vmax.f32 %v235_v23, %v1871_v29  ;;  %v525_v35 = vmax.f32 %v236_v24, %v1872_v30  ;;  %v604_v36 = vadd.f32 %v2268_v19, %v522_v31  ;;  %v2067_v31 = vld [vmem:[#allocation8 + $0x18] sm:$0xff] }
  0x9e   :  { %1527 = vmatpush.bf16.msrb.mxu2 %v2067_v31 }
  0x9f   :  { %v605_v37 = vadd.f32 %v2274_v26, %v523_v33  ;;  %v606_v38 = vadd.f32 %v2271_v20, %v524_v34  ;;  %v607_v39 = vadd.f32 %v2277_v27, %v525_v35  ;;  %v668_v40 = vmax.f32 %v604_v36, 0.0 }
  0xa0   :  { %v180_v41 = vpop.f32.mrf.mxu0 }
  0xa1   :  { %v669_v44 = vmax.f32 %v605_v37, 0.0  ;;  %v670_v45 = vmax.f32 %v606_v38, 0.0  ;;  %v671_v46 = vmax.f32 %v607_v39, 0.0  ;;  %v2292_v47 = vpack.c.bf16 %v668_v40, %v668_v40 }
  0xa2   :  { %v237_v48 = vrot.slane %v180_v41, 2  ;;  %v238_v49 = vrot.slane %v180_v41, 4  ;;  %v239_v50 = vrot.slane %v180_v41, 6  ;;  %v1873_v51 = vrot.slane %v180_v41, 9 }
  0xa3   :  { %v2294_v52 = vpack.c.bf16 %v669_v44, %v669_v44  ;;  %v2296_v53 = vpack.c.bf16 %v670_v45, %v670_v45  ;;  %v2298_v54 = vpack.c.bf16 %v671_v46, %v671_v46  ;;  %v913_v55 = vunpack.c.l.b16 %v2292_v47 }
  0xa4   :  { %v1874_v56 = vrot.slane %v237_v48, 9  ;;  %v1875_v57 = vrot.slane %v238_v49, 9  ;;  %v1876_v58 = vrot.slane %v239_v50, 9  ;;  %v526_v59 = vmax.f32 %v180_v41, %v1873_v51 }
  0xa5   :  { %v914_v60 = vunpack.c.l.b16 %v2294_v52  ;;  %v915_v61 = vunpack.c.l.b16 %v2296_v53  ;;  %v916_v2 = vunpack.c.l.b16 %v2298_v54  ;;  %v977_v3 = vrot.slane %v913_v55, 7  ;;  %v2066_v52 = vld [vmem:[#allocation8 + $0x10] sm:$0xff] }
  0xa6   :  { %v527_v63 = vmax.f32 %v237_v48, %v1874_v56  ;;  %v528_v0 = vmax.f32 %v238_v49, %v1875_v57  ;;  %v529_v1 = vmax.f32 %v239_v50, %v1876_v58  ;;  %v608_v6 = vadd.f32 %v2280_v32, %v526_v59  ;;  %v1124_v50 = vld [vmem:[#allocation2 + $0x4] sm:$0x1]  ;;  %1528 = vmatpush.bf16.msrb.mxu2 %v2066_v52 }
  0xa7   :  { %v978_v4 = vrot.slane %v914_v60, 6  ;;  %v981_v5 = vrot.slane %v915_v61, 5  ;;  %v984_v15 = vrot.slane %v916_v2, 4  ;;  %v1962_v53 = vunpack.i.l.s16 %v914_v60 }
  0xa8   :  { %v609_v7 = vadd.f32 %v2290_v43, %v527_v63  ;;  %v183_v8 = vpop.f32.mrf.mxu0  ;;  %v610_v10 = vadd.f32 %v2287_v42, %v528_v0  ;;  %v611_v11 = vadd.f32 %v2304_v62, %v529_v1  ;;  %v672_v12 = vmax.f32 %v608_v6, 0.0 }
  0xa9   :  { %v980_v9 = vsel %vm979_vm7, %v978_v4, %v977_v3  ;;  %v240_v23 = vrot.slane %v183_v8, 2  ;;  %v241_v24 = vrot.slane %v183_v8, 4  ;;  %v242_v29 = vrot.slane %v183_v8, 6 }
  0xaa   :  { %v983_v14 = vsel %vm982_vm8, %v981_v5, %v980_v9  ;;  %v673_v17 = vmax.f32 %v609_v7, 0.0  ;;  %v674_v18 = vmax.f32 %v610_v10, 0.0  ;;  %v675_v21 = vmax.f32 %v611_v11, 0.0  ;;  %v1121_v5 = vld [vmem:[#allocation2] sm:$0xf] }
  0xab   :  { %v2317_v22 = vpack.c.bf16 %v672_v12, %v672_v12  ;;  %v1877_v30 = vrot.slane %v183_v8, 9  ;;  %v1878_v35 = vrot.slane %v240_v23, 9  ;;  %v1879_v36 = vrot.slane %v241_v24, 9 }
  0xac   :  { %v2319_v25 = vpack.c.bf16 %v673_v17, %v673_v17  ;;  %v2321_v28 = vpack.c.bf16 %v674_v18, %v674_v18  ;;  %v739_v33 = vpack.c.bf16 %v675_v21, %v675_v21  ;;  %v1880_v39 = vrot.slane %v242_v29, 9 }
  0xad   :  { %v917_v34 = vunpack.c.l.b16 %v2317_v22  ;;  %v530_v40 = vmax.f32 %v183_v8, %v1877_v30  ;;  %v531_v45 = vmax.f32 %v240_v23, %v1878_v35  ;;  %v986_v46 = vsel %vm985_vm9, %v984_v15, %v983_v14 }
  0xae   :  { %v918_v37 = vunpack.c.l.b16 %v2319_v25  ;;  %v919_v38 = vunpack.c.l.b16 %v2321_v28  ;;  %v2326_v41 = vunpack.c.l.b16 %v739_v33  ;;  %v532_v51 = vmax.f32 %v241_v24, %v1879_v36 }
  0xaf   :  { %v987_v44 = vrot.slane %v917_v34, 3  ;;  %v533_v58 = vmax.f32 %v242_v29, %v1880_v39  ;;  %v2338_v63 = vunpack.i.l.s16 %v915_v61  ;;  %v612_v1 = vadd.f32 %v2268_v19, %v530_v40 }
  0xb0   :  { %v990_v48 = vrot.slane %v918_v37, 2  ;;  %v993_v49 = vrot.slane %v919_v38, 1  ;;  %v1088_v57 = vpack.c.b16 %v2326_v41, %v2326_v41  ;;  %v185_v59 = vpop.f32.mrf.mxu0  ;;  %v613_v3 = vadd.f32 %v2274_v26, %v531_v45 }
  0xb1   :  { %v989_v56 = vsel %vm988_vm10, %v987_v44, %v986_v46  ;;  %v614_v6 = vadd.f32 %v2271_v20, %v532_v51  ;;  %v615_v7 = vadd.f32 %v2277_v27, %v533_v58  ;;  %v676_v9 = vmax.f32 %v612_v1, 0.0  ;;  %v802_v58 = vld [vmem:[#allocation2 + $0x8] sm:$0x1] }
  0xb2   :  { %v992_v0 = vsel %vm991_vm11, %v990_v48, %v989_v56  ;;  %v1125_v61 = vsel %vm2259_vm6, %v1088_v57, %v1124_v50  ;;  %v677_v10 = vmax.f32 %v613_v3, 0.0  ;;  %v243_v11 = vrot.slane %v185_v59, 2 }
  0xb3   :  { %v995_v4 = vsel %vm994_vm12, %v993_v49, %v992_v0  ;;  %1126 = vst [vmem:[#allocation2 + $0x4] sm:$0x1] %v1125_v61  ;;  %v678_v12 = vmax.f32 %v614_v6, 0.0  ;;  %v679_v14 = vmax.f32 %v615_v7, 0.0  ;;  %v244_v15 = vrot.slane %v185_v59, 4 }
  0xb4   :  { %v1087_v8 = vpack.c.b16 %v995_v4, %v995_v4  ;;  %v245_v17 = vrot.slane %v185_v59, 6  ;;  %v2356_v21 = vpack.c.bf16 %v676_v9, %v676_v9  ;;  %v2358_v23 = vpack.c.bf16 %v677_v10, %v677_v10 }
  0xb5   :  { %v1881_v24 = vrot.slane %v185_v59, 9  ;;  %v2360_v29 = vpack.c.bf16 %v678_v12, %v678_v12  ;;  %v2362_v30 = vpack.c.bf16 %v679_v14, %v679_v14  ;;  %v1882_v31 = vrot.slane %v243_v11, 9 }
  0xb6   :  { %v1122_v18 = vsel %vm2346_vm15, %v1087_v8, %v1121_v5  ;;  %v1883_v33 = vrot.slane %v244_v15, 9  ;;  %v921_v35 = vunpack.c.l.b16 %v2356_v21  ;;  %v922_v36 = vunpack.c.l.b16 %v2358_v23 }
  0xb7   :  { %1123 = vst [vmem:[#allocation2] sm:$0xf] %v1122_v18  ;;  %v1884_v39 = vrot.slane %v245_v17, 9  ;;  %v534_v40 = vmax.f32 %v185_v59, %v1881_v24  ;;  %v2368_v44 = vunpack.i.l.s16 %v916_v2  ;;  %v1380_v45 = vrot.slane %v1962_v53, 7  ;;  %v828_v59 = vld [vmem:[#allocation2 + $0xc] sm:$0x1] }
  0xb8   :  { %v923_v46 = vunpack.c.l.b16 %v2360_v29  ;;  %v535_v48 = vmax.f32 %v243_v11, %v1882_v31  ;;  %v924_v49 = vunpack.c.l.b16 %v2362_v30  ;;  %v996_v50 = vrot.slane %v921_v35, 7  ;;  %v188_v0 = vpop.f32.mrf.mxu0 }
  0xb9   :  { %v997_v51 = vrot.slane %v922_v36, 6  ;;  %v536_v52 = vmax.f32 %v244_v15, %v1883_v33  ;;  %v1961_v56 = vunpack.i.l.s16 %v913_v55  ;;  %v537_v2 = vmax.f32 %v245_v17, %v1884_v39 }
  0xba   :  { %v999_v57 = vrot.slane %v923_v46, 5  ;;  %v616_v53 = vadd.f32 %v2280_v32, %v534_v40  ;;  %v1383_v3 = vrot.slane %v2338_v63, 6  ;;  %v1385_v4 = vrot.slane %v2368_v44, 5 }
  0xbb   :  { %v998_v54 = vsel %vm979_vm7, %v997_v51, %v996_v50  ;;  %v2381_v1 = vsel %vm1381_vm14, %v1380_v45, %v1961_v56  ;;  %v617_v47 = vadd.f32 %v2290_v43, %v535_v48  ;;  %v1001_v5 = vrot.slane %v924_v49, 4 }
  0xbc   :  { %v1000_v55 = vsel %vm982_vm8, %v999_v57, %v998_v54  ;;  %v618_v61 = vadd.f32 %v2287_v42, %v536_v52  ;;  %v619_v6 = vadd.f32 %v2304_v62, %v537_v2  ;;  %v680_v7 = vmax.f32 %v616_v53, 0.0 }
  0xbd   :  { %v681_v8 = vmax.f32 %v617_v47, 0.0  ;;  %v803_v9 = vsel %vm2259_vm6, 0, %v802_v58  ;;  %v829_v10 = vsel %vm2253_vm4, 0, %v828_v59  ;;  %v246_v14 = vrot.slane %v188_v0, 2 }
  0xbe   :  { %v682_v11 = vmax.f32 %v618_v61, 0.0  ;;  %v683_v12 = vmax.f32 %v619_v6, 0.0  ;;  %804 = vst [vmem:[#allocation2 + $0x8] sm:$0x1] %v803_v9  ;;  %v247_v15 = vrot.slane %v188_v0, 4  ;;  %v2395_v17 = vpack.c.bf16 %v680_v7, %v680_v7 }
  0xbf   :  { %v2397_v18 = vpack.c.bf16 %v681_v8, %v681_v8  ;;  %830 = vst [vmem:[#allocation2 + $0xc] sm:$0x1] %v829_v10  ;;  %v248_v23 = vrot.slane %v188_v0, 6  ;;  %v1885_v24 = vrot.slane %v188_v0, 9  ;;  %v1886_v39 = vrot.slane %v246_v14, 9 }
  0xc0   :  { %v2399_v31 = vpack.c.bf16 %v682_v11, %v682_v11  ;;  %v747_v33 = vpack.c.bf16 %v683_v12, %v683_v12  ;;  %v1887_v40 = vrot.slane %v247_v15, 9  ;;  %v925_v45 = vunpack.c.l.b16 %v2395_v17  ;;  %v2416_v7 = vpop.f32.mrf.mxu0 }
  0xc1   :  { %v926_v48 = vunpack.c.l.b16 %v2397_v18  ;;  %v1888_v50 = vrot.slane %v248_v23, 9  ;;  %v538_v51 = vmax.f32 %v188_v0, %v1885_v24  ;;  %v539_v57 = vmax.f32 %v246_v14, %v1886_v39 }
  0xc2   :  { %v927_v52 = vunpack.c.l.b16 %v2399_v31  ;;  %v2404_v56 = vunpack.c.l.b16 %v747_v33  ;;  %v540_v54 = vmax.f32 %v247_v15, %v1887_v40  ;;  %v2408_v2 = vunpack.i.l.s16 %v917_v34 }
  0xc3   :  { %v1002_v53 = vsel %vm985_vm9, %v1001_v5, %v1000_v55  ;;  %v1003_v58 = vrot.slane %v925_v45, 3  ;;  %v1005_v59 = vrot.slane %v926_v48, 2  ;;  %v541_v61 = vmax.f32 %v248_v23, %v1888_v50 }
  0xc4   :  { %v1007_v47 = vrot.slane %v927_v52, 1  ;;  %v1090_v0 = vpack.c.b16 %v2404_v56, %v2404_v56  ;;  %v620_v6 = vadd.f32 %v2268_v19, %v538_v51  ;;  %v2420_v22 = vunpack.i.l.s16 %v918_v37 }
  0xc5   :  { %v1970_v34 = vunpack.i.l.s16 %v922_v36  ;;  %v1004_v55 = vsel %vm988_vm10, %v1003_v58, %v1002_v53  ;;  %v621_v5 = vadd.f32 %v2274_v26, %v539_v57  ;;  %v622_v10 = vadd.f32 %v2271_v20, %v540_v54  ;;  %v1127_v15 = vld [vmem:[#allocation2 + $0x8] sm:$0xf] }
  0xc6   :  { %v1006_v8 = vsel %vm991_vm11, %v1005_v59, %v1004_v55  ;;  %v1130_v9 = vld [vmem:[#allocation2 + $0xc] sm:$0x1]  ;;  %v623_v11 = vadd.f32 %v2277_v27, %v541_v61  ;;  %v684_v12 = vmax.f32 %v620_v6, 0.0  ;;  %v249_v36 = vrot.slane %v2416_v7, 2 }
  0xc7   :  { %v1008_v14 = vsel %vm994_vm12, %v1007_v47, %v1006_v8  ;;  %v1131_v25 = vsel %vm2259_vm6, %v1090_v0, %v1130_v9  ;;  %v685_v37 = vmax.f32 %v621_v5, 0.0  ;;  %v686_v18 = vmax.f32 %v622_v10, 0.0  ;;  %v2073_v47 = vld [vmem:[#allocation8 + $0x8] sm:$0xff] }
  0xc8   :  { %v1089_v17 = vpack.c.b16 %v1008_v14, %v1008_v14  ;;  %1132 = vst [vmem:[#allocation2 + $0xc] sm:$0x1] %v1131_v25  ;;  %v687_v23 = vmax.f32 %v623_v11, 0.0  ;;  %v2431_v24 = vpack.c.bf16 %v684_v12, %v684_v12  ;;  %v2435_v33 = vunpack.i.l.s16 %v923_v46  ;;  %1237 = vmatpush.bf16.msrb.mxu1 %v2073_v47  ;;  %v193_v25 = vpop.f32.mrf.mxu0 }
  0xc9   :  { %v749_v39 = vpack.c.bf16 %v685_v37, %v685_v37  ;;  %v250_v40 = vrot.slane %v2416_v7, 4  ;;  %v1889_v50 = vrot.slane %v2416_v7, 9  ;;  %v2441_v51 = vunpack.i.l.s16 %v924_v49 }
  0xca   :  { %v1395_v57 = vrot.slane %v1970_v34, 7  ;;  %v1128_v54 = vsel %vm2346_vm15, %v1089_v17, %v1127_v15  ;;  %v2445_v53 = vpack.c.bf16 %v686_v18, %v686_v18  ;;  %v929_v29 = vunpack.c.l.b16 %v2431_v24  ;;  %v805_v15 = vld [vmem:[#allocation2 + $0x10] sm:$0x1] }
  0xcb   :  { %1129 = vst [vmem:[#allocation2 + $0x8] sm:$0xf] %v1128_v54  ;;  %v930_v46 = vunpack.c.l.b16 %v749_v39  ;;  %v1890_v58 = vrot.slane %v249_v36, 9  ;;  %v1891_v59 = vrot.slane %v250_v40, 9  ;;  %v1969_v0 = vunpack.i.l.s16 %v921_v35 }
  0xcc   :  { %v2450_v61 = vpack.c.bf16 %v687_v23, %v687_v23  ;;  %v931_v30 = vunpack.c.l.b16 %v2445_v53  ;;  %v251_v49 = vrot.slane %v2416_v7, 6  ;;  %v542_v55 = vmax.f32 %v2416_v7, %v1889_v50 }
  0xcd   :  { %v1010_v34 = vrot.slane %v930_v46, 6  ;;  %v543_v5 = vmax.f32 %v249_v36, %v1890_v58  ;;  %v2458_v9 = vsel %vm1381_vm14, %v1395_v57, %v1969_v0  ;;  %v2462_v10 = vunpack.i.l.s16 %v925_v45 }
  0xce   :  { %v2464_v11 = vunpack.i.l.s16 %v926_v48  ;;  %v1009_v12 = vrot.slane %v929_v29, 7  ;;  %v544_v14 = vmax.f32 %v250_v40, %v1891_v59  ;;  %v932_v37 = vunpack.c.l.b16 %v2450_v61 }
  0xcf   :  { %v1012_v36 = vrot.slane %v931_v30, 5  ;;  %v1892_v17 = vrot.slane %v251_v49, 9  ;;  %v624_v18 = vadd.f32 %v2280_v32, %v542_v55  ;;  %v2475_v48 = vunpack.i.l.s16 %v930_v46 }
  0xd0   :  { %v1011_v45 = vsel %vm979_vm7, %v1010_v34, %v1009_v12  ;;  %v625_v23 = vadd.f32 %v2290_v43, %v543_v5  ;;  %v626_v39 = vadd.f32 %v2287_v42, %v544_v14  ;;  %v806_v50 = vsel %vm2259_vm6, 0, %v805_v15 }
  0xd1   :  { %v688_v40 = vmax.f32 %v624_v18, 0.0  ;;  %v252_v57 = vrot.slane %v193_v25, 2  ;;  %v253_v54 = vrot.slane %v193_v25, 4  ;;  %807 = vst [vmem:[#allocation2 + $0x10] sm:$0x1] %v806_v50  ;;  %v254_v47 = vrot.slane %v193_v25, 6 }
  0xd2   :  { %v689_v58 = vmax.f32 %v625_v23, 0.0  ;;  %v690_v59 = vmax.f32 %v626_v39, 0.0  ;;  %v1893_v0 = vrot.slane %v193_v25, 9  ;;  %v1013_v61 = vsel %vm982_vm8, %v1012_v36, %v1011_v45  ;;  %v2072_v45 = vld [vmem:[#allocation8] sm:$0xff] }
  0xd3   :  { %v752_v34 = vpack.c.bf16 %v688_v40, %v688_v40  ;;  %v1894_v46 = vrot.slane %v252_v57, 9  ;;  %v1895_v55 = vrot.slane %v253_v54, 9  ;;  %v1896_v14 = vrot.slane %v254_v47, 9  ;;  %v2075_v40 = vld [vmem:[#allocation8 + $0x28] sm:$0xff]  ;;  %1238 = vmatpush.bf16.msrb.mxu1 %v2072_v45 }
  0xd4   :  { %v2482_v12 = vpack.c.bf16 %v689_v58, %v689_v58  ;;  %v2484_v5 = vpack.c.bf16 %v690_v59, %v690_v59  ;;  %v546_v18 = vmax.f32 %v193_v25, %v1893_v0  ;;  %v1014_v35 = vrot.slane %v932_v37, 4  ;;  %1664 = vmatpush.bf16.msrb.mxu3 %v2075_v40 }
  0xd5   :  { %v933_v15 = vunpack.c.l.b16 %v752_v34  ;;  %v547_v21 = vmax.f32 %v252_v57, %v1894_v46  ;;  %v548_v8 = vmax.f32 %v253_v54, %v1895_v55  ;;  %v549_v50 = vmax.f32 %v254_v47, %v1896_v14 }
  0xd6   :  { %v3110_v23 = vunpack.c.l.b16 %v2482_v12  ;;  %v3109_v39 = vunpack.c.l.b16 %v2484_v5  ;;  %v628_v36 = vadd.f32 %v2268_v19, %v546_v18  ;;  %v1015_v58 = vsel %vm985_vm9, %v1014_v35, %v1013_v61 }
  0xd7   :  { %v1016_v6 = vrot.slane %v933_v15, 3  ;;  %v629_v59 = vadd.f32 %v2274_v26, %v547_v21  ;;  %v630_v25 = vadd.f32 %v2271_v20, %v548_v8  ;;  %v631_v0 = vadd.f32 %v2277_v27, %v549_v50 }
  0xd8   :  { %v1018_v57 = vrot.slane %v3110_v23, 2  ;;  %v1020_v54 = vrot.slane %v3109_v39, 1  ;;  %v692_v47 = vmax.f32 %v628_v36, 0.0  ;;  %v1401_v34 = vrot.slane %v2462_v10, 4  ;;  %v1133_v36 = vld [vmem:[#allocation2 + $0x10] sm:$0xf] }
  0xd9   :  { %v1017_v35 = vsel %vm988_vm10, %v1016_v6, %v1015_v58  ;;  %v693_v61 = vmax.f32 %v629_v59, 0.0  ;;  %v694_v46 = vmax.f32 %v630_v25, 0.0  ;;  %v1403_v21 = vrot.slane %v2464_v11, 3 }
  0xda   :  { %v2502_v8 = vunpack.i.l.s16 %v931_v30  ;;  %v1019_v55 = vsel %vm991_vm11, %v1018_v57, %v1017_v35  ;;  %v695_v14 = vmax.f32 %v631_v0, 0.0  ;;  %v2505_v18 = vunpack.i.l.s16 %v932_v37 }
  0xdb   :  { %v1021_v50 = vsel %vm994_vm12, %v1020_v54, %v1019_v55  ;;  %v2508_v45 = vpack.c.bf16 %v692_v47, %v692_v47  ;;  %v1967_v6 = vunpack.i.l.s16 %v919_v38  ;;  %v2514_v10 = vunpack.i.l.s16 %v929_v29  ;;  %v1552_v38 = vld [vmem:[#allocation2 + $0x8] sm:$0xe] }
  0xdc   :  { %v545_v30 = vmax.f32 %v251_v49, %v1892_v17  ;;  %v1091_v11 = vpack.c.b16 %v1021_v50, %v1021_v50  ;;  %v2519_v37 = vunpack.i.l.s16 %v933_v15  ;;  %v2521_v40 = vpack.c.bf16 %v693_v61, %v693_v61  ;;  %v2074_v50 = vld [vmem:[#allocation8 + $0x20] sm:$0xff] }
  0xdd   :  { %v2523_v58 = vpack.c.bf16 %v694_v46, %v694_v46  ;;  %v1384_v28 = vsel %vm979_vm7, %v1383_v3, %v2381_v1  ;;  %v2532_v29 = vpack.c.bf16 %v695_v14, %v695_v14  ;;  %v1968_v7 = vunpack.i.l.s16 %v2326_v41  ;;  %v203_v14 = vpop.f32.mrf.mxu1  ;;  %1665 = vmatpush.bf16.msrb.mxu3 %v2074_v50 }
  0xde   :  { %v1134_v24 = vsel %vm2346_vm15, %v1091_v11, %v1133_v36  ;;  %v937_v17 = vunpack.c.l.b16 %v2508_v45  ;;  %v1975_v15 = vunpack.i.l.s16 %v927_v52  ;;  %v1391_v63 = vrot.slane %v1967_v6, 2 }
  0xdf   :  { %1135 = vst [vmem:[#allocation2 + $0x10] sm:$0xf] %v1134_v24  ;;  %v2540_v1 = vadd.f32 %v2304_v62, %v545_v30  ;;  %v1976_v3 = vunpack.i.l.s16 %v2404_v56  ;;  %v1386_v59 = vsel %vm982_vm8, %v1385_v4, %v1384_v28  ;;  %v938_v25 = vunpack.c.l.b16 %v2521_v40 }
  0xe0   :  { %v939_v57 = vunpack.c.l.b16 %v2523_v58  ;;  %v3132_v31 = vrot.slane %v2408_v2, 4  ;;  %v940_v54 = vunpack.c.l.b16 %v2532_v29  ;;  %v3133_v0 = vrot.slane %v2420_v22, 3  ;;  %v2566_v22 = vpop.f32.mrf.mxu0  ;;  %v1550_v29 = vld [vmem:[#allocation2] sm:$0xe] }
  0xe1   :  { %v1393_v47 = vrot.slane %v1968_v7, 1  ;;  %v3134_v44 = vrot.slane %v2435_v33, 6  ;;  %v1022_v35 = vrot.slane %v937_v17, 7  ;;  %v3135_v2 = vrot.slane %v2441_v51, 5 }
  0xe2   :  { %v1388_v52 = vsel %vm985_vm9, %v3132_v31, %v1386_v59  ;;  %v1405_v55 = vrot.slane %v1975_v15, 2  ;;  %v1407_v6 = vrot.slane %v1976_v3, 1  ;;  %v265_v11 = vrot.slane %v203_v14, 4 }
  0xe3   :  { %v1390_v56 = vsel %vm988_vm10, %v3133_v0, %v1388_v52  ;;  %v1398_v4 = vsel %vm979_vm7, %v3134_v44, %v2458_v9  ;;  %v264_v9 = vrot.slane %v203_v14, 2  ;;  %v266_v40 = vrot.slane %v203_v14, 6 }
  0xe4   :  { %v1392_v61 = vsel %vm991_vm11, %v1391_v63, %v1390_v56  ;;  %v1400_v46 = vsel %vm982_vm8, %v3135_v2, %v1398_v4  ;;  %v1909_v28 = vrot.slane %v203_v14, 9  ;;  %v255_v7 = vrot.slane %v2566_v22, 2 }
  0xe5   :  { %v1394_v36 = vsel %vm994_vm12, %v1393_v47, %v1392_v61  ;;  %v1402_v33 = vsel %vm985_vm9, %v1401_v34, %v1400_v46  ;;  %v1910_v24 = vrot.slane %v264_v9, 9  ;;  %v256_v15 = vrot.slane %v2566_v22, 4 }
  0xe6   :  { %v1404_v30 = vsel %vm988_vm10, %v1403_v21, %v1402_v33  ;;  %v1911_v59 = vrot.slane %v265_v11, 9  ;;  %v1912_v31 = vrot.slane %v266_v40, 9  ;;  %v562_v34 = vmax.f32 %v203_v14, %v1909_v28 }
  0xe7   :  { %v1406_v51 = vsel %vm991_vm11, %v1405_v55, %v1404_v30  ;;  %v1023_v3 = vrot.slane %v938_v25, 6  ;;  %v563_v0 = vmax.f32 %v264_v9, %v1910_v24  ;;  %v1897_v21 = vrot.slane %v2566_v22, 9 }
  0xe8   :  { %v1408_v63 = vsel %vm994_vm12, %v1407_v6, %v1406_v51  ;;  %v564_v56 = vmax.f32 %v265_v11, %v1911_v59  ;;  %v565_v47 = vmax.f32 %v266_v40, %v1912_v31  ;;  %v644_v44 = vadd.f32 %v2268_v19, %v562_v34 }
  0xe9   :  { %v1493_v52 = vpack.c.b16 %v1408_v63, %v1394_v36  ;;  %v1898_v4 = vrot.slane %v255_v7, 9  ;;  %v1025_v61 = vrot.slane %v939_v57, 5  ;;  %v645_v2 = vadd.f32 %v2274_v26, %v563_v0  ;;  %v808_v63 = vld [vmem:[#allocation2 + $0x18] sm:$0x1] }
  0xea   :  { %v1899_v46 = vrot.slane %v256_v15, 9  ;;  %v550_v55 = vmax.f32 %v2566_v22, %v1897_v21  ;;  %v646_v14 = vadd.f32 %v2271_v20, %v564_v56  ;;  %v647_v50 = vadd.f32 %v2277_v27, %v565_v47 }
  0xeb   :  { %2033 = vmatmul.msk.bf16.vlgmr.msrb.gmra.mxu2 %vm1218_vm0, %v1493_v52  ;;  %v708_v36 = vmax.f32 %v644_v44, 0.0  ;;  %v551_v33 = vmax.f32 %v255_v7, %v1898_v4  ;;  %v2584_v6 = vunpack.i.l.s16 %v938_v25  ;;  %v709_v9 = vmax.f32 %v645_v2, 0.0 }
  0xec   :  { %v552_v30 = vmax.f32 %v256_v15, %v1899_v46  ;;  %v632_v11 = vadd.f32 %v2280_v32, %v550_v55  ;;  %v710_v40 = vmax.f32 %v646_v14, 0.0  ;;  %v711_v28 = vmax.f32 %v647_v50, 0.0 }
  0xed   :  { %v2587_v51 = vpack.c.bf16 %v708_v36, %v708_v36  ;;  %v633_v24 = vadd.f32 %v2290_v43, %v551_v33  ;;  %v1024_v59 = vsel %vm979_vm7, %v1023_v3, %v1022_v35  ;;  %v2591_v31 = vpack.c.bf16 %v709_v9, %v709_v9  ;;  %v1551_v33 = vld [vmem:[#allocation2 + $0x4] sm:$0x1] }
  0xee   :  { %v634_v34 = vadd.f32 %v2287_v42, %v552_v30  ;;  %v696_v7 = vmax.f32 %v632_v11, 0.0  ;;  %v2594_v25 = vpack.c.bf16 %v710_v40, %v710_v40  ;;  %v2596_v52 = vpack.c.bf16 %v711_v28, %v711_v28  ;;  %v2068_v40 = vld [vmem:[#allocation2 + $0x4] sm:$0xf0]  ;;  %v1935_v28 = vld [vmem:[#allocation2] sm:$0xf] }
  0xef   :  { %v953_v15 = vunpack.c.l.b16 %v2587_v51  ;;  %v697_v0 = vmax.f32 %v633_v24, 0.0  ;;  %v954_v21 = vunpack.c.l.b16 %v2591_v31  ;;  %v809_v35 = vsel %vm2259_vm6, 0, %v808_v63 }
  0xf0   :  { %v698_v56 = vmax.f32 %v634_v34, 0.0  ;;  %v2600_v47 = vpack.c.bf16 %v696_v7, %v696_v7  ;;  %v2606_v3 = vunpack.i.l.s16 %v939_v57  ;;  %v2610_v44 = vunpack.i.l.s16 %v940_v54  ;;  %810 = vst [vmem:[#allocation2 + $0x18] sm:$0x1] %v809_v35  ;;  %v814_v7 = vld [vmem:[#allocation2 + $0x28] sm:$0x1] }
  0xf1   :  { %v955_v4 = vunpack.c.l.b16 %v2594_v25  ;;  %v1048_v2 = vrot.slane %v953_v15, 7  ;;  %v1049_v46 = vrot.slane %v954_v21, 6  ;;  %v257_v55 = vrot.slane %v2566_v22, 6 }
  0xf2   :  { %v2618_v14 = vpack.c.bf16 %v697_v0, %v697_v0  ;;  %v2620_v58 = vpack.c.bf16 %v698_v56, %v698_v56  ;;  %v1026_v57 = vsel %vm982_vm8, %v1025_v61, %v1024_v59  ;;  %v1027_v50 = vrot.slane %v940_v54, 4  ;;  %v2635_v61 = vpop.f32.mrf.mxu1 }
  0xf3   :  { %v2627_v36 = vunpack.i.l.s16 %v937_v17  ;;  %v956_v9 = vunpack.c.l.b16 %v2596_v52  ;;  %v1051_v22 = vrot.slane %v955_v4, 5  ;;  %v941_v30 = vunpack.c.l.b16 %v2600_v47 }
  0xf4   :  { %v3108_v11 = vunpack.c.l.b16 %v2618_v14  ;;  %v1050_v17 = vsel %vm979_vm7, %v1049_v46, %v1048_v2  ;;  %v3107_v54 = vunpack.c.l.b16 %v2620_v58  ;;  %v1028_v24 = vsel %vm985_vm9, %v1027_v50, %v1026_v57 }
  0xf5   :  { %v1900_v63 = vrot.slane %v257_v55, 9  ;;  %v1029_v59 = vrot.slane %v941_v30, 3  ;;  %v1936_v56 = vor.u32 %v2068_v40, %v1935_v28  ;;  %v267_v35 = vrot.slane %v2635_v61, 2 }
  0xf6   :  { %v1031_v34 = vrot.slane %v3108_v11, 2  ;;  %v1033_v0 = vrot.slane %v3107_v54, 1  ;;  %v268_v2 = vrot.slane %v2635_v61, 4  ;;  %v1052_v46 = vsel %vm982_vm8, %v1051_v22, %v1050_v17 }
  0xf7   :  { %v1053_v57 = vrot.slane %v956_v9, 4  ;;  %v1030_v50 = vsel %vm988_vm10, %v1029_v59, %v1028_v24  ;;  %v1913_v45 = vrot.slane %v2635_v61, 9  ;;  %1957 = vmatmul.msk.bf16.vlgmr.msrb.gmra.mxu1 %vm1218_vm0, %v1936_v56  ;;  %v1914_v40 = vrot.slane %v267_v35, 9  ;;  %v1139_v54 = vld [vmem:[#allocation2 + $0x18] sm:$0xf] }
  0xf8   :  { %v1032_v41 = vsel %vm991_vm11, %v1031_v34, %v1030_v50  ;;  %v1915_v28 = vrot.slane %v268_v2, 9  ;;  %v815_v49 = vsel %vm2259_vm6, 0, %v814_v7  ;;  %v2659_v22 = vmax.f32 %v257_v55, %v1900_v63  ;;  %v1553_v50 = vld [vmem:[#allocation2 + $0xc] sm:$0x1]  ;;  %v198_v63 = vpop.f32.mrf.mxu0 }
  0xf9   :  { %v1034_v17 = vsel %vm994_vm12, %v1033_v0, %v1032_v41  ;;  %v566_v24 = vmax.f32 %v2635_v61, %v1913_v45  ;;  %816 = vst [vmem:[#allocation2 + $0x28] sm:$0x1] %v815_v49  ;;  %v567_v53 = vmax.f32 %v267_v35, %v1914_v40  ;;  %v1054_v56 = vsel %vm985_vm9, %v1053_v57, %v1052_v46 }
  0xfa   :  { %v1093_v59 = vpack.c.b16 %v1034_v17, %v1034_v17  ;;  %v568_v34 = vmax.f32 %v268_v2, %v1915_v28  ;;  %v3136_v7 = vmov 0  ;;  %v2037_v55 = vrot.slane %v1550_v29, 9 }
  0xfb   :  { %v648_v11 = vadd.f32 %v2280_v32, %v566_v24  ;;  %v3137_v7 = vsel %vm2665_vm3, 4294967295, %v3136_v7  ;;  %v1592_v41 = vrot.slane %v1551_v33, 5  ;;  %v649_v45 = vadd.f32 %v2290_v43, %v567_v53 }
  0xfc   :  { %3138 = vst [vmem:[#allocation13_spill] sm:$0xff] %v3137_v7  ;;  %v1140_v49 = vsel %vm2346_vm15, %v1093_v59, %v1139_v54  ;;  %v650_v0 = vadd.f32 %v2287_v42, %v568_v34  ;;  %v2038_v35 = vrot.slane %v1552_v38, 9  ;;  %v269_v2 = vrot.slane %v2635_v61, 6 }
  0xfd   :  { %1141 = vst [vmem:[#allocation2 + $0x18] sm:$0xf] %v1140_v49  ;;  %v712_v46 = vmax.f32 %v648_v11, 0.0  ;;  %v1593_v57 = vsel %vm2665_vm3, %v2037_v55, %v1592_v41  ;;  %v1596_v40 = vrot.slane %v1553_v50, 5  ;;  %v713_v28 = vmax.f32 %v649_v45, 0.0 }
  0xfe   :  { %v714_v29 = vmax.f32 %v650_v0, 0.0  ;;  %v1622_v33 = vunpack.c.l.b16 %v1593_v57  ;;  %v258_v17 = vrot.slane %v198_v63, 2  ;;  %v259_v53 = vrot.slane %v198_v63, 4 }
  0xff   :  { %v776_v24 = vpack.c.bf16 %v712_v46, %v712_v46  ;;  %v1597_v54 = vsel %vm2665_vm3, %v2038_v35, %v1596_v40  ;;  %v260_v59 = vrot.slane %v198_v63, 6  ;;  %v2678_v34 = vpack.c.bf16 %v713_v28, %v713_v28 }
 0x100   :  { %v2680_v38 = vpack.c.bf16 %v714_v29, %v714_v29  ;;  %v1623_v61 = vunpack.c.l.b16 %v1597_v54  ;;  %v1901_v11 = vrot.slane %v198_v63, 9  ;;  %v1902_v39 = vrot.slane %v258_v17, 9 }
 0x101   :  { %v957_v49 = vunpack.c.l.b16 %v776_v24  ;;  %v1903_v55 = vrot.slane %v259_v53, 9  ;;  %v1904_v50 = vrot.slane %v260_v59, 9  ;;  %v3112_v41 = vunpack.c.l.b16 %v2678_v34 }
 0x102   :  { %3139 = vst [vmem:[#allocation14_spill] sm:$0xff] %v2680_v38  ;;  %v3111_v45 = vunpack.c.l.b16 %v2680_v38  ;;  %v1630_v0 = vpack.c.b16 %v1623_v61, %v1622_v33  ;;  %v554_v46 = vmax.f32 %v198_v63, %v1901_v11  ;;  %v2686_v35 = vunpack.i.l.s16 %v954_v21 }
 0x103   :  { %v1055_v57 = vrot.slane %v957_v49, 3  ;;  %v555_v40 = vmax.f32 %v258_v17, %v1902_v39  ;;  %v556_v28 = vmax.f32 %v259_v53, %v1903_v55  ;;  %v1057_v29 = vrot.slane %v3112_v41, 2  ;;  %v208_v39 = vpop.f32.mrf.mxu2 }
 0x104   :  { %3140 = vst [vmem:[#allocation15_spill] sm:$0xff] %v2686_v35  ;;  %v1059_v24 = vrot.slane %v3111_v45, 1  ;;  %2053 = vmatmul.msk.bf16.vlgmr.msrb.gmra.mxu3 %vm1218_vm0, %v1630_v0  ;;  %v557_v54 = vmax.f32 %v260_v59, %v1904_v50  ;;  %v636_v23 = vadd.f32 %v2268_v19, %v554_v46  ;;  %v1916_v33 = vrot.slane %v269_v2, 9  ;;  %v1151_v19 = vld [vmem:[#allocation2 + $0x28] sm:$0xf] }
 0x105   :  { %v1056_v63 = vsel %vm988_vm10, %v1055_v57, %v1054_v56  ;;  %v637_v31 = vadd.f32 %v2274_v26, %v555_v40  ;;  %v638_v21 = vadd.f32 %v2271_v20, %v556_v28  ;;  %v2699_v17 = vunpack.i.l.s16 %v955_v4  ;;  %v811_v35 = vld [vmem:[#allocation2 + $0x20] sm:$0x1]  ;;  %v1556_v60 = vld [vmem:[#allocation2 + $0x18] sm:$0xe] }
 0x106   :  { %v1058_v53 = vsel %vm991_vm11, %v1057_v29, %v1056_v63  ;;  %v639_v61 = vadd.f32 %v2277_v27, %v557_v54  ;;  %v270_v11 = vrot.slane %v208_v39, 2  ;;  %v700_v55 = vmax.f32 %v636_v23, 0.0 }
 0x107   :  { %3141 = vst [vmem:[#allocation16_spill] sm:$0xff] %v2699_v17  ;;  %v1060_v59 = vsel %vm994_vm12, %v1059_v24, %v1058_v53  ;;  %v701_v50 = vmax.f32 %v637_v31, 0.0  ;;  %v271_v56 = vrot.slane %v208_v39, 4  ;;  %v2706_v0 = vunpack.i.l.s16 %v956_v9 }
 0x108   :  { %v1097_v46 = vpack.c.b16 %v1060_v59, %v1060_v59  ;;  %v702_v57 = vmax.f32 %v638_v21, 0.0  ;;  %v272_v25 = vrot.slane %v208_v39, 6  ;;  %v2710_v4 = vunpack.i.l.s16 %v941_v30 }
 0x109   :  { %3142 = vst [vmem:[#allocation17_spill] sm:$0xff] %v2706_v0  ;;  %v569_v40 = vmax.f32 %v269_v2, %v1916_v33  ;;  %v1917_v28 = vrot.slane %v208_v39, 9  ;;  %v1918_v29 = vrot.slane %v270_v11, 9  ;;  %v2714_v23 = vunpack.i.l.s16 %v957_v49 }
 0x10a   :  { %v1152_v24 = vsel %vm2346_vm15, %v1097_v46, %v1151_v19  ;;  %v703_v54 = vmax.f32 %v639_v61, 0.0  ;;  %v1919_v63 = vrot.slane %v271_v56, 9  ;;  %v764_v52 = vpack.c.bf16 %v700_v55, %v700_v55 }
 0x10b   :  { %3143 = vst [vmem:[#allocation18_spill] sm:$0xff] %v2714_v23  ;;  %v765_v9 = vpack.c.bf16 %v701_v50, %v701_v50  ;;  %v1920_v31 = vrot.slane %v272_v25, 9  ;;  %v570_v21 = vmax.f32 %v208_v39, %v1917_v28  ;;  %v2718_v47 = vunpack.i.l.s16 %v953_v15 }
 0x10c   :  { %1153 = vst [vmem:[#allocation2 + $0x28] sm:$0xf] %v1152_v24  ;;  %v2722_v30 = vadd.f32 %v2304_v62, %v2659_v22  ;;  %v766_v2 = vpack.c.bf16 %v702_v57, %v702_v57  ;;  %v571_v33 = vmax.f32 %v270_v11, %v1918_v29  ;;  %v2729_v39 = vadd.f32 %v2304_v62, %v569_v40  ;;  %v2091_v11 = vld [vmem:[%s3102_s2] ss:$0 sm:$0xff]  ;;  %v213_v24 = vpop.f32.mrf.mxu3 }
 0x10d   :  { %3144 = vst [vmem:[#allocation19_spill] sm:$0xff] %v2718_v47  ;;  %v572_v15 = vmax.f32 %v271_v56, %v1919_v63  ;;  %v573_v19 = vmax.f32 %v272_v25, %v1920_v31  ;;  %v767_v55 = vpack.c.bf16 %v703_v54, %v703_v54  ;;  %v945_v22 = vunpack.c.l.b16 %v764_v52  ;;  %v837_v47 = vld [vmem:[#allocation2 + $0x24] sm:$0x1] }
 0x10e   :  { %v946_v50 = vunpack.c.l.b16 %v765_v9  ;;  %v652_v46 = vadd.f32 %v2091_v11, %v570_v21  ;;  %v947_v57 = vunpack.c.l.b16 %v766_v2  ;;  %v653_v28 = vadd.f32 %v2274_v26, %v571_v33 }
 0x10f   :  { %v654_v29 = vadd.f32 %v2271_v20, %v572_v15  ;;  %v655_v40 = vadd.f32 %v2277_v27, %v573_v19  ;;  %v276_v51 = vrot.slane %v213_v24, 2  ;;  %v277_v56 = vrot.slane %v213_v24, 4 }
 0x110   :  { %v716_v61 = vmax.f32 %v652_v46, 0.0  ;;  %v278_v25 = vrot.slane %v213_v24, 6  ;;  %v717_v54 = vmax.f32 %v653_v28, 0.0  ;;  %v1925_v9 = vrot.slane %v213_v24, 9 }
 0x111   :  { %v718_v63 = vmax.f32 %v654_v29, 0.0  ;;  %v719_v52 = vmax.f32 %v655_v40, 0.0  ;;  %v1926_v53 = vrot.slane %v276_v51, 9  ;;  %v1927_v45 = vrot.slane %v277_v56, 9 }
 0x112   :  { %v780_v31 = vpack.c.bf16 %v716_v61, %v716_v61  ;;  %v1928_v21 = vrot.slane %v278_v25, 9  ;;  %v948_v2 = vunpack.c.l.b16 %v767_v55  ;;  %v781_v49 = vpack.c.bf16 %v717_v54, %v717_v54 }
 0x113   :  { %v782_v33 = vpack.c.bf16 %v718_v63, %v718_v63  ;;  %v578_v41 = vmax.f32 %v213_v24, %v1925_v9  ;;  %v579_v59 = vmax.f32 %v276_v51, %v1926_v53  ;;  %v580_v19 = vmax.f32 %v277_v56, %v1927_v45 }
 0x114   :  { %v961_v15 = vunpack.c.l.b16 %v780_v31  ;;  %v581_v7 = vmax.f32 %v278_v25, %v1928_v21  ;;  %v1035_v46 = vrot.slane %v945_v22, 7  ;;  %v783_v23 = vpack.c.bf16 %v719_v52, %v719_v52 }
 0x115   :  { %v962_v0 = vunpack.c.l.b16 %v781_v49  ;;  %v660_v17 = vadd.f32 %v2091_v11, %v578_v41  ;;  %v1036_v28 = vrot.slane %v946_v50, 6  ;;  %v2738_v29 = vunpack.i.l.s16 %v946_v50 }
 0x116   :  { %v661_v61 = vadd.f32 %v2274_v26, %v579_v59  ;;  %v662_v40 = vadd.f32 %v2271_v20, %v580_v19  ;;  %v2742_v38 = vunpack.i.l.s16 %v945_v22  ;;  %v963_v55 = vunpack.c.l.b16 %v782_v33  ;;  %v200_v26 = vpop.f32.mrf.mxu0 }
 0x117   :  { %v1061_v54 = vrot.slane %v961_v15, 7  ;;  %v1062_v24 = vrot.slane %v962_v0, 6  ;;  %v2744_v63 = vrot.slane %v947_v57, 5  ;;  %v2746_v45 = vunpack.i.l.s16 %v947_v57 }
 0x118   :  { %v663_v53 = vadd.f32 %v2277_v27, %v581_v7  ;;  %v724_v49 = vmax.f32 %v660_v17, 0.0  ;;  %v2749_v41 = vrot.slane %v948_v2, 4  ;;  %v964_v51 = vunpack.c.l.b16 %v783_v23 }
 0x119   :  { %v725_v50 = vmax.f32 %v661_v61, 0.0  ;;  %v726_v11 = vmax.f32 %v662_v40, 0.0  ;;  %v2752_v20 = vsel %vm979_vm7, %v1036_v28, %v1035_v46  ;;  %v2754_v59 = vunpack.i.l.s16 %v948_v2 }
 0x11a   :  { %v727_v56 = vmax.f32 %v663_v53, 0.0  ;;  %v1063_v57 = vsel %vm979_vm7, %v1062_v24, %v1061_v54  ;;  %v1064_v25 = vrot.slane %v963_v55, 5  ;;  %v788_v52 = vpack.c.bf16 %v724_v49, %v724_v49 }
 0x11b   :  { %v789_v27 = vpack.c.bf16 %v725_v50, %v725_v50  ;;  %v2758_v7 = vpack.c.bf16 %v726_v11, %v726_v11  ;;  %v261_v17 = vrot.slane %v200_v26, 2  ;;  %v262_v23 = vrot.slane %v200_v26, 4  ;;  %v2782_v11 = vpop.f32.mrf.mxu2 }
 0x11c   :  { %v263_v9 = vrot.slane %v200_v26, 6  ;;  %v1066_v31 = vrot.slane %v964_v51, 4  ;;  %v2760_v21 = vunpack.i.l.s16 %v962_v0  ;;  %v2762_v33 = vunpack.i.l.s16 %v963_v55 }
 0x11d   :  { %v1905_v2 = vrot.slane %v200_v26, 9  ;;  %v2764_v19 = vpack.c.bf16 %v727_v56, %v727_v56  ;;  %v969_v46 = vunpack.c.l.b16 %v788_v52  ;;  %v1906_v28 = vrot.slane %v261_v17, 9 }
 0x11e   :  { %3145 = vst [vmem:[#allocation20_spill] sm:$0xff] %v2760_v21  ;;  %v1907_v61 = vrot.slane %v262_v23, 9  ;;  %v1065_v54 = vsel %vm982_vm8, %v1064_v25, %v1063_v57  ;;  %v970_v24 = vunpack.c.l.b16 %v789_v27  ;;  %v1908_v53 = vrot.slane %v263_v9, 9 }
 0x11f   :  { %3146 = vst [vmem:[#allocation21_spill] sm:$0xff] %v2762_v33  ;;  %v2769_v50 = vunpack.i.l.s16 %v961_v15  ;;  %v2771_v0 = vunpack.i.l.s16 %v964_v51  ;;  %v558_v56 = vmax.f32 %v200_v26, %v1905_v2  ;;  %v559_v52 = vmax.f32 %v261_v17, %v1906_v28 }
 0x120   :  { %v560_v22 = vmax.f32 %v262_v23, %v1907_v61  ;;  %v2776_v40 = vsel %vm985_vm9, %v1066_v31, %v1065_v54  ;;  %v3120_v25 = vunpack.c.l.b16 %v2764_v19  ;;  %v1074_v15 = vrot.slane %v969_v46, 7 }
 0x121   :  { %3147 = vst [vmem:[#allocation22_spill] sm:$0xff] %v2769_v50  ;;  %v1075_v27 = vrot.slane %v970_v24, 6  ;;  %v561_v51 = vmax.f32 %v263_v9, %v1908_v53  ;;  %v640_v49 = vadd.f32 %v2280_v32, %v558_v56  ;;  %v641_v55 = vadd.f32 %v2290_v43, %v559_v52 }
 0x122   :  { %3148 = vst [vmem:[#allocation23_spill] sm:$0xff] %v2771_v0  ;;  %v3149_v26 = vunpack.c.l.b16 %v2758_v7  ;;  %v642_v23 = vadd.f32 %v2287_v42, %v560_v22  ;;  %v812_v31 = vsel %vm2259_vm6, 0, %v811_v35  ;;  %v838_v2 = vsel %vm2253_vm4, 0, %v837_v47 }
 0x123   :  { %v2791_v28 = vunpack.i.l.s16 %v969_v46  ;;  %v643_v9 = vadd.f32 %v2304_v62, %v561_v51  ;;  %v704_v61 = vmax.f32 %v640_v49, 0.0  ;;  %v705_v54 = vmax.f32 %v641_v55, 0.0  ;;  %813 = vst [vmem:[#allocation2 + $0x20] sm:$0x1] %v812_v31 }
 0x124   :  { %v1077_v17 = vrot.slane %v3149_v26, 5  ;;  %v2796_v53 = vrot.slane %v3120_v25, 4  ;;  %v706_v56 = vmax.f32 %v642_v23, 0.0  ;;  %839 = vst [vmem:[#allocation2 + $0x24] sm:$0x1] %v838_v2  ;;  %v273_v22 = vrot.slane %v2782_v11, 2 }
 0x125   :  { %3150 = vst [vmem:[#allocation24_spill] sm:$0xff] %v2791_v28  ;;  %v274_v35 = vrot.slane %v2782_v11, 4  ;;  %v707_v52 = vmax.f32 %v643_v9, 0.0  ;;  %v2800_v26 = vpack.c.bf16 %v704_v61, %v704_v61  ;;  %v2802_v47 = vpack.c.bf16 %v705_v54, %v705_v54 }
 0x126   :  { %v1921_v46 = vrot.slane %v2782_v11, 9  ;;  %v2805_v49 = vpack.c.bf16 %v706_v56, %v706_v56  ;;  %v1039_v55 = vsel %vm982_vm8, %v2744_v63, %v2752_v20  ;;  %v1922_v51 = vrot.slane %v273_v22, 9 }
 0x127   :  { %v1923_v23 = vrot.slane %v274_v35, 9  ;;  %v771_v31 = vpack.c.bf16 %v707_v52, %v707_v52  ;;  %v949_v2 = vunpack.c.l.b16 %v2800_v26  ;;  %v3123_v57 = vunpack.c.l.b16 %v2802_v47 }
 0x128   :  { %v574_v9 = vmax.f32 %v2782_v11, %v1921_v46  ;;  %v2813_v61 = vunpack.i.l.s16 %v970_v24  ;;  %v3122_v54 = vunpack.c.l.b16 %v2805_v49  ;;  %v575_v25 = vmax.f32 %v273_v22, %v1922_v51 }
 0x129   :  { %v576_v56 = vmax.f32 %v274_v35, %v1923_v23  ;;  %v1076_v33 = vsel %vm979_vm7, %v1075_v27, %v1074_v15  ;;  %v2817_v28 = vunpack.c.l.b16 %v771_v31  ;;  %v1042_v63 = vrot.slane %v949_v2, 3  ;;  %v817_v23 = vld [vmem:[#allocation2 + $0x30] sm:$0x1]  ;;  %v2832_v31 = vpop.f32.mrf.mxu3 }
 0x12a   :  { %v1044_v20 = vrot.slane %v3123_v57, 2  ;;  %v1041_v52 = vsel %vm985_vm9, %v2749_v41, %v1039_v55  ;;  %v1046_v26 = vrot.slane %v3122_v54, 1  ;;  %v656_v24 = vadd.f32 %v2280_v32, %v574_v9  ;;  %v1145_v54 = vld [vmem:[#allocation2 + $0x20] sm:$0xf] }
 0x12b   :  { %v657_v46 = vadd.f32 %v2290_v43, %v575_v25  ;;  %v1043_v22 = vsel %vm988_vm10, %v1042_v63, %v1041_v52  ;;  %v1096_v15 = vpack.c.b16 %v2817_v28, %v2817_v28  ;;  %v1148_v27 = vld [vmem:[#allocation2 + $0x24] sm:$0x1]  ;;  %v275_v35 = vrot.slane %v2782_v11, 6 }
 0x12c   :  { %v658_v51 = vadd.f32 %v2287_v42, %v576_v56  ;;  %v1078_v41 = vsel %vm982_vm8, %v1077_v17, %v1076_v33  ;;  %v3151_v55 = vunpack.c.l.b16 %v2758_v7  ;;  %v1045_v25 = vsel %vm991_vm11, %v1044_v20, %v1043_v22 }
 0x12d   :  { %v720_v63 = vmax.f32 %v656_v24, 0.0  ;;  %v1047_v52 = vsel %vm994_vm12, %v1046_v26, %v1045_v25  ;;  %v1149_v11 = vsel %vm2259_vm6, %v1096_v15, %v1148_v27  ;;  %v721_v57 = vmax.f32 %v657_v46, 0.0 }
 0x12e   :  { %v2837_v9 = vunpack.i.l.s16 %v3151_v55  ;;  %v722_v56 = vmax.f32 %v658_v51, 0.0  ;;  %v1095_v21 = vpack.c.b16 %v1047_v52, %v1047_v52  ;;  %1150 = vst [vmem:[#allocation2 + $0x24] sm:$0x1] %v1149_v11  ;;  %v818_v7 = vsel %vm2259_vm6, 0, %v817_v23  ;;  %v820_v52 = vld [vmem:[#allocation2 + $0x38] sm:$0x1] }
 0x12f   :  { %v2843_v50 = vpack.c.bf16 %v720_v63, %v720_v63  ;;  %v279_v33 = vrot.slane %v2832_v31, 2  ;;  %v1924_v17 = vrot.slane %v275_v35, 9  ;;  %v2848_v20 = vpack.c.bf16 %v721_v57, %v721_v57  ;;  %819 = vst [vmem:[#allocation2 + $0x30] sm:$0x1] %v818_v7 }
 0x130   :  { %v2850_v24 = vpack.c.bf16 %v722_v56, %v722_v56  ;;  %v280_v26 = vrot.slane %v2832_v31, 4  ;;  %v1146_v46 = vsel %vm2346_vm15, %v1095_v21, %v1145_v54  ;;  %v1929_v15 = vrot.slane %v2832_v31, 9 }
 0x131   :  { %v965_v22 = vunpack.c.l.b16 %v2843_v50  ;;  %v1930_v27 = vrot.slane %v279_v33, 9  ;;  %1147 = vst [vmem:[#allocation2 + $0x20] sm:$0xf] %v1146_v46  ;;  %v966_v51 = vunpack.c.l.b16 %v2848_v20  ;;  %v281_v57 = vrot.slane %v2832_v31, 6 }
 0x132   :  { %v3125_v23 = vunpack.c.l.b16 %v2850_v24  ;;  %v1931_v55 = vrot.slane %v280_v26, 9  ;;  %v1080_v25 = vsel %vm985_vm9, %v2796_v53, %v1078_v41  ;;  %v582_v21 = vmax.f32 %v2832_v31, %v1929_v15 }
 0x133   :  { %v1068_v63 = vrot.slane %v965_v22, 3  ;;  %v583_v54 = vmax.f32 %v279_v33, %v1930_v27  ;;  %v2865_v11 = vmax.f32 %v275_v35, %v1924_v17  ;;  %v1070_v56 = vrot.slane %v966_v51, 2  ;;  %v831_v27 = vld [vmem:[#allocation2 + $0x14] sm:$0x1] }
 0x134   :  { %v1072_v7 = vrot.slane %v3125_v23, 1  ;;  %v584_v46 = vmax.f32 %v280_v26, %v1931_v55  ;;  %v2871_v0 = vunpack.i.l.s16 %v949_v2  ;;  %v664_v41 = vadd.f32 %v2280_v32, %v582_v21  ;;  %v834_v23 = vld [vmem:[#allocation2 + $0x1c] sm:$0x1] }
 0x135   :  { %v1069_v53 = vsel %vm988_vm10, %v1068_v63, %v2776_v40  ;;  %v665_v31 = vadd.f32 %v2290_v43, %v583_v54  ;;  %v1932_v35 = vrot.slane %v281_v57, 9  ;;  %v821_v15 = vsel %vm2259_vm6, 0, %v820_v52 }
 0x136   :  { %v1071_v33 = vsel %vm991_vm11, %v1070_v56, %v1069_v53  ;;  %v666_v17 = vadd.f32 %v2287_v42, %v584_v46  ;;  %v3152_v2 = vunpack.c.l.b16 %v2802_v47  ;;  %v1157_v55 = vld [vmem:[#allocation2 + $0x30] sm:$0xf]  ;;  %v728_v32 = vmax.f32 %v664_v41, 0.0  ;;  %822 = vst [vmem:[#allocation2 + $0x38] sm:$0x1] %v821_v15 }
 0x137   :  { %v1073_v40 = vsel %vm994_vm12, %v1072_v7, %v1071_v33  ;;  %v729_v63 = vmax.f32 %v665_v31, 0.0  ;;  %v691_v54 = vmax.f32 %v2540_v1, 0.0  ;;  %v699_v42 = vmax.f32 %v2722_v30, 0.0 }
 0x138   :  { %v2883_v26 = vunpack.i.l.s16 %v3152_v2  ;;  %v1099_v43 = vpack.c.b16 %v1073_v40, %v1073_v40  ;;  %v730_v21 = vmax.f32 %v666_v17, 0.0  ;;  %v2888_v56 = vpack.c.bf16 %v728_v32, %v728_v32 }
 0x139   :  { %v2890_v52 = vpack.c.bf16 %v729_v63, %v729_v63  ;;  %v832_v47 = vsel %vm2253_vm4, 0, %v831_v27  ;;  %v835_v7 = vsel %vm2253_vm4, 0, %v834_v23  ;;  %v755_v41 = vpack.c.bf16 %v691_v54, %v691_v54 }
 0x13a   :  { %v1158_v46 = vsel %vm2346_vm15, %v1099_v43, %v1157_v55  ;;  %v2898_v53 = vpack.c.bf16 %v730_v21, %v730_v21  ;;  %v763_v31 = vpack.c.bf16 %v699_v42, %v699_v42  ;;  %833 = vst [vmem:[#allocation2 + $0x14] sm:$0x1] %v832_v47  ;;  %v585_v1 = vmax.f32 %v281_v57, %v1932_v35 }
 0x13b   :  { %1159 = vst [vmem:[#allocation2 + $0x30] sm:$0xf] %v1158_v46  ;;  %v973_v30 = vunpack.c.l.b16 %v2888_v56  ;;  %v974_v33 = vunpack.c.l.b16 %v2890_v52  ;;  %v3153_v17 = vunpack.c.l.b16 %v2482_v12  ;;  %v936_v23 = vunpack.c.l.b16 %v755_v41 }
 0x13c   :  { %v975_v27 = vunpack.c.l.b16 %v2898_v53  ;;  %836 = vst [vmem:[#allocation2 + $0x1c] sm:$0x1] %v835_v7  ;;  %v944_v2 = vunpack.c.l.b16 %v763_v31  ;;  %v3154_v40 = vunpack.c.l.b16 %v2484_v5  ;;  %v3155_v35 = vunpack.c.l.b16 %v2618_v14 }
 0x13d   :  { %v1982_v15 = vunpack.i.l.s16 %v3153_v17  ;;  %v1081_v32 = vrot.slane %v973_v30, 3  ;;  %v1083_v57 = vrot.slane %v974_v33, 2  ;;  %v3156_v12 = vrot.slane %v2475_v48, 7 }
 0x13e   :  { %v1983_v55 = vunpack.i.l.s16 %v3154_v40  ;;  %v1990_v63 = vunpack.i.l.s16 %v3155_v35  ;;  %v1085_v21 = vrot.slane %v975_v27, 1  ;;  %v1092_v54 = vpack.c.b16 %v936_v23, %v936_v23 }
 0x13f   :  { %v1410_v43 = vsel %vm1381_vm14, %v3156_v12, %v2514_v10  ;;  %v1984_v5 = vunpack.i.l.s16 %v936_v23  ;;  %v3157_v42 = vunpack.c.l.b16 %v2620_v58  ;;  %v1082_v7 = vsel %vm988_vm10, %v1081_v32, %v1080_v25  ;;  %v1163_v58 = vld [vmem:[#allocation2 + $0x38] sm:$0xf] }
 0x140   :  { %v1094_v46 = vpack.c.b16 %v944_v2, %v944_v2  ;;  %v1992_v41 = vunpack.i.l.s16 %v944_v2  ;;  %v3158_v14 = vrot.slane %v2502_v8, 6  ;;  %v1084_v48 = vsel %vm991_vm11, %v1083_v57, %v1082_v7 }
 0x141   :  { %v1991_v47 = vunpack.i.l.s16 %v3157_v42  ;;  %v3159_v10 = vrot.slane %v2505_v18, 5  ;;  %v1417_v40 = vrot.slane %v1982_v15, 3  ;;  %v1419_v35 = vrot.slane %v1983_v55, 2  ;;  %v1136_v12 = vld [vmem:[#allocation2 + $0x14] sm:$0x1] }
 0x142   :  { %v1412_v31 = vsel %vm979_vm7, %v3158_v14, %v1410_v43  ;;  %v1086_v23 = vsel %vm994_vm12, %v1085_v21, %v1084_v48  ;;  %v3160_v25 = vrot.slane %v2519_v37, 4  ;;  %v1421_v32 = vrot.slane %v1984_v5, 1  ;;  %v2069_v42 = vld [vmem:[#allocation2 + $0x14] sm:$0xf0]  ;;  %v840_v37 = vld [vmem:[#allocation2 + $0x2c] sm:$0x1] }
 0x143   :  { %v1414_v17 = vsel %vm982_vm8, %v3159_v10, %v1412_v31  ;;  %v3161_v8 = vrot.slane %v2584_v6, 7  ;;  %v1101_v43 = vpack.c.b16 %v1086_v23, %v1086_v23  ;;  %v1137_v18 = vsel %vm2259_vm6, %v1092_v54, %v1136_v12  ;;  %v1142_v7 = vld [vmem:[#allocation2 + $0x1c] sm:$0x1] }
 0x144   :  { %v1416_v2 = vsel %vm985_vm9, %v3160_v25, %v1414_v17  ;;  %v3162_v55 = vrot.slane %v2606_v3, 6  ;;  %1138 = vst [vmem:[#allocation2 + $0x14] sm:$0x1] %v1137_v18  ;;  %v3163_v6 = vrot.slane %v2610_v44, 5  ;;  %v1431_v14 = vrot.slane %v1990_v63, 3 }
 0x145   :  { %v1424_v57 = vsel %vm1381_vm14, %v3161_v8, %v2627_v36  ;;  %v1418_v15 = vsel %vm988_vm10, %v1417_v40, %v1416_v2  ;;  %v1433_v31 = vrot.slane %v1991_v47, 2  ;;  %v1164_v54 = vsel %vm2346_vm15, %v1101_v43, %v1163_v58  ;;  %v1939_v40 = vld [vmem:[#allocation2 + $0x10] sm:$0xf] }
 0x146   :  { %v1426_v21 = vsel %vm979_vm7, %v3162_v55, %v1424_v57  ;;  %v1420_v5 = vsel %vm991_vm11, %v1419_v35, %v1418_v15  ;;  %v1143_v3 = vsel %vm2259_vm6, %v1094_v46, %v1142_v7  ;;  %v3164_v10 = vrot.slane %v2710_v4, 4  ;;  %v1554_v35 = vld [vmem:[#allocation2 + $0x10] sm:$0xe]  ;;  %1165 = vst [vmem:[#allocation2 + $0x38] sm:$0xf] %v1164_v54  ;;  %v3172_v7 = vld [vmem:[#allocation14_spill] sm:$0xff] }
 0x147   :  { %v1428_v36 = vsel %vm982_vm8, %v3163_v6, %v1426_v21  ;;  %v1422_v48 = vsel %vm994_vm12, %v1421_v32, %v1420_v5  ;;  %v1443_v44 = vrot.slane %v2871_v0, 4  ;;  %v1435_v47 = vrot.slane %v1992_v41, 1  ;;  %1144 = vst [vmem:[#allocation2 + $0x1c] sm:$0x1] %v1143_v3  ;;  %v3169_v55 = vld [vmem:[#allocation19_spill] sm:$0xff]  ;;  %v3177_v3 = vld [vmem:[#allocation17_spill] sm:$0xff] }
 0x148   :  { %v1430_v17 = vsel %vm985_vm9, %v3164_v10, %v1428_v36  ;;  %v1940_v23 = vor.u32 %v2069_v42, %v1939_v40  ;;  %v1445_v58 = vrot.slane %v2883_v26, 3  ;;  %v715_v12 = vmax.f32 %v2729_v39, 0.0  ;;  %v3170_v21 = vld [vmem:[#allocation15_spill] sm:$0xff]  ;;  %v3175_v36 = vld [vmem:[#allocation16_spill] sm:$0xff] }
 0x149   :  { %v1432_v63 = vsel %vm988_vm10, %v1431_v14, %v1430_v17  ;;  %v841_v4 = vsel %vm2253_vm4, 0, %v840_v37  ;;  %v659_v25 = vadd.f32 %v2304_v62, %v2865_v11  ;;  %v667_v0 = vadd.f32 %v2304_v62, %v585_v1 }
 0x14a   :  { %v1434_v46 = vsel %vm991_vm11, %v1433_v31, %v1432_v63  ;;  %1958 = vmatmul.msk.bf16.gmra.mxu1 %vm1218_vm0, %v1940_v23  ;;  %842 = vst [vmem:[#allocation2 + $0x2c] sm:$0x1] %v841_v4  ;;  %v3165_v26 = vunpack.c.l.b16 %v2678_v34  ;;  %v779_v8 = vpack.c.bf16 %v715_v12, %v715_v12  ;;  %v3166_v39 = vunpack.c.l.b16 %v2805_v49 }
 0x14b   :  { %v1436_v2 = vsel %vm994_vm12, %v1435_v47, %v1434_v46  ;;  %v3167_v43 = vrot.slane %v2738_v29, 7  ;;  %v2039_v18 = vrot.slane %v1554_v35, 9  ;;  %v2040_v62 = vrot.slane %v1556_v60, 9  ;;  %v1555_v49 = vld [vmem:[#allocation2 + $0x14] sm:$0x1]  ;;  %v3179_v47 = vld [vmem:[#allocation18_spill] sm:$0xff] }
 0x14c   :  { %v2006_v41 = vunpack.i.l.s16 %v3165_v26  ;;  %v1494_v32 = vpack.c.b16 %v1436_v2, %v1422_v48  ;;  %v1999_v57 = vunpack.i.l.s16 %v3166_v39  ;;  %v3168_v1 = vrot.slane %v2746_v45, 6 }
 0x14d   :  { %v1438_v11 = vsel %vm1381_vm14, %v3167_v43, %v2742_v38  ;;  %v3171_v34 = vrot.slane %v3170_v21, 7  ;;  %v960_v37 = vunpack.c.l.b16 %v779_v8  ;;  %v3173_v5 = vunpack.c.l.b16 %v3172_v7 }
 0x14e   :  { %v1440_v15 = vsel %vm979_vm7, %v3168_v1, %v1438_v11  ;;  %2034 = vmatmul.msk.bf16.gmra.mxu2 %vm1218_vm0, %v1494_v32  ;;  %v3174_v38 = vrot.slane %v2754_v59, 5  ;;  %v3176_v45 = vrot.slane %v3175_v36, 6  ;;  %v2000_v31 = vunpack.i.l.s16 %v2817_v28  ;;  %v1557_v12 = vld [vmem:[#allocation2 + $0x1c] sm:$0x1]  ;;  %v1943_v11 = vld [vmem:[#allocation2 + $0x20] sm:$0xf] }
 0x14f   :  { %v1452_v42 = vsel %vm1381_vm14, %v3171_v34, %v3169_v55  ;;  %v2007_v29 = vunpack.i.l.s16 %v3173_v5  ;;  %v3178_v48 = vrot.slane %v3177_v3, 5  ;;  %v1459_v17 = vrot.slane %v2006_v41, 3  ;;  %v846_v55 = vld [vmem:[#allocation2 + $0x3c] sm:$0x1]  ;;  %v1560_v3 = vld [vmem:[#allocation2 + $0x28] sm:$0xe] }
 0x150   :  { %v1442_v6 = vsel %vm982_vm8, %v3174_v38, %v1440_v15  ;;  %v1454_v14 = vsel %vm979_vm7, %v3176_v45, %v1452_v42  ;;  %v1600_v40 = vrot.slane %v1555_v49, 5  ;;  %v1098_v35 = vpack.c.b16 %v960_v37, %v960_v37 }
 0x151   :  { %v1444_v54 = vsel %vm985_vm9, %v1443_v44, %v1442_v6  ;;  %v1456_v10 = vsel %vm982_vm8, %v3178_v48, %v1454_v14  ;;  %v1447_v63 = vrot.slane %v1999_v57, 2  ;;  %v3180_v59 = vrot.slane %v3179_v47, 4  ;;  %v1154_v8 = vld [vmem:[#allocation2 + $0x2c] sm:$0x1]  ;;  %v843_v57 = vld [vmem:[#allocation2 + $0x34] sm:$0x1] }
 0x152   :  { %v1479_v60 = vrot.slane %v2813_v61, 7  ;;  %v1481_v46 = vrot.slane %v2837_v9, 6  ;;  %v2008_v28 = vunpack.i.l.s16 %v960_v37  ;;  %v1446_v44 = vsel %vm988_vm10, %v1445_v58, %v1444_v54  ;;  %v2070_v37 = vld [vmem:[#allocation2 + $0x24] sm:$0xf0]  ;;  %v3183_v6 = vld [vmem:[#allocation23_spill] sm:$0xff] }
 0x153   :  { %v1458_v23 = vsel %vm985_vm9, %v3180_v59, %v1456_v10  ;;  %v3181_v4 = vunpack.c.l.b16 %v2764_v19  ;;  %v1601_v41 = vsel %vm2665_vm3, %v2039_v18, %v1600_v40  ;;  %v1604_v32 = vrot.slane %v1557_v12, 5  ;;  %v1559_v54 = vld [vmem:[#allocation2 + $0x24] sm:$0x1]  ;;  %v3184_v48 = vld [vmem:[#allocation22_spill] sm:$0xff]  ;;  %v3185_v10 = vld [vmem:[#allocation20_spill] sm:$0xff] }
 0x154   :  { %v1461_v39 = vrot.slane %v2007_v29, 2  ;;  %v3008_v43 = vunpack.i.l.s16 %v965_v22  ;;  %v1155_v61 = vsel %vm2259_vm6, %v1098_v35, %v1154_v8  ;;  %v1449_v9 = vrot.slane %v2000_v31, 1  ;;  %v1558_v29 = vld [vmem:[#allocation2 + $0x20] sm:$0xe]  ;;  %v3187_v40 = vld [vmem:[#allocation24_spill] sm:$0xff] }
 0x155   :  { %v2020_v2 = vunpack.i.l.s16 %v3181_v4  ;;  %v1460_v58 = vsel %vm988_vm10, %v1459_v17, %v1458_v23  ;;  %v1605_v19 = vsel %vm2665_vm3, %v2040_v62, %v1604_v32  ;;  %1156 = vst [vmem:[#allocation2 + $0x2c] sm:$0x1] %v1155_v61  ;;  %v1448_v18 = vsel %vm991_vm11, %v1447_v63, %v1446_v44  ;;  %v3188_v4 = vld [vmem:[#allocation21_spill] sm:$0xff] }
 0x156   :  { %v723_v1 = vmax.f32 %v659_v25, 0.0  ;;  %v731_v15 = vmax.f32 %v667_v0, 0.0  ;;  %v1624_v21 = vunpack.c.l.b16 %v1601_v41  ;;  %v1625_v50 = vunpack.c.l.b16 %v1605_v19 }
 0x157   :  { %v1463_v22 = vrot.slane %v2008_v28, 1  ;;  %v844_v34 = vsel %vm2253_vm4, 0, %v843_v57  ;;  %v2021_v42 = vunpack.i.l.s16 %v973_v30  ;;  %v1462_v49 = vsel %vm991_vm11, %v1461_v39, %v1460_v58 }
 0x158   :  { %v787_v7 = vpack.c.bf16 %v723_v1, %v723_v1  ;;  %v795_v62 = vpack.c.bf16 %v731_v15, %v731_v15  ;;  %845 = vst [vmem:[#allocation2 + $0x34] sm:$0x1] %v844_v34  ;;  %v1631_v5 = vpack.c.b16 %v1625_v50, %v1624_v21  ;;  %v1450_v25 = vsel %vm994_vm12, %v1449_v9, %v1448_v18 }
 0x159   :  { %v1944_v0 = vor.u32 %v2070_v37, %v1943_v11  ;;  %v847_v38 = vsel %vm2253_vm4, 0, %v846_v55  ;;  %v1469_v36 = vrot.slane %v3183_v6, 5  ;;  %v1483_v45 = vrot.slane %v2020_v2, 5 }
 0x15a   :  { %848 = vst [vmem:[#allocation2 + $0x3c] sm:$0x1] %v847_v38  ;;  %v968_v56 = vunpack.c.l.b16 %v787_v7  ;;  %v976_v30 = vunpack.c.l.b16 %v795_v62  ;;  %v1471_v14 = vrot.slane %v3008_v43, 4  ;;  %2054 = vmatmul.msk.bf16.gmra.mxu3 %vm1218_vm0, %v1631_v5  ;;  %v1464_v31 = vsel %vm994_vm12, %v1463_v22, %v1462_v49  ;;  %v1947_v5 = vld [vmem:[#allocation2 + $0x30] sm:$0xf] }
 0x15b   :  { %v3186_v17 = vrot.slane %v3185_v10, 7  ;;  %v1480_v35 = vsel %vm1381_vm14, %v1479_v60, %v3187_v40  ;;  %v1485_v63 = vrot.slane %v2021_v42, 4  ;;  %v1495_v47 = vpack.c.b16 %v1464_v31, %v1450_v25  ;;  %1959 = vmatmul.msk.bf16.gmra.mxu1 %vm1218_vm0, %v1944_v0  ;;  %v2071_v25 = vld [vmem:[#allocation2 + $0x34] sm:$0xf0]  ;;  %v1562_v0 = vld [vmem:[#allocation2 + $0x30] sm:$0xe] }
 0x15c   :  { %v2041_v59 = vrot.slane %v1558_v29, 9  ;;  %v1100_v23 = vpack.c.b16 %v968_v56, %v968_v56  ;;  %v1561_v12 = vld [vmem:[#allocation2 + $0x2c] sm:$0x1]  ;;  %v2014_v28 = vunpack.i.l.s16 %v966_v51  ;;  %v2022_v44 = vunpack.i.l.s16 %v974_v33 }
 0x15d   :  { %v1466_v13 = vsel %vm1381_vm14, %v3186_v17, %v3184_v48  ;;  %v3189_v2 = vrot.slane %v3188_v4, 6  ;;  %v1482_v32 = vsel %vm979_vm7, %v1481_v46, %v1480_v35  ;;  %v1608_v60 = vrot.slane %v1559_v54, 5 }
 0x15e   :  { %v2042_v8 = vrot.slane %v1560_v3, 9  ;;  %v1612_v39 = vrot.slane %v1561_v12, 5  ;;  %v1102_v57 = vpack.c.b16 %v976_v30, %v976_v30  ;;  %v1484_v9 = vsel %vm982_vm8, %v1483_v45, %v1482_v32  ;;  %2035 = vmatmul.msk.bf16.gmra.mxu2 %vm1218_vm0, %v1495_v47  ;;  %v1564_v45 = vld [vmem:[#allocation2 + $0x38] sm:$0xe] }
 0x15f   :  { %v1468_v41 = vsel %vm979_vm7, %v3189_v2, %v1466_v13  ;;  %v1160_v43 = vld [vmem:[#allocation2 + $0x34] sm:$0x1]  ;;  %v1609_v20 = vsel %vm2665_vm3, %v2041_v59, %v1608_v60  ;;  %v3190_v52 = vunpack.c.l.b16 %v2850_v24  ;;  %v2023_v46 = vunpack.i.l.s16 %v975_v27 }
 0x160   :  { %v1470_v61 = vsel %vm982_vm8, %v1469_v36, %v1468_v41  ;;  %v1161_v51 = vsel %vm2259_vm6, %v1100_v23, %v1160_v43  ;;  %v1473_v11 = vrot.slane %v2014_v28, 3  ;;  %v1487_v19 = vrot.slane %v2022_v44, 3 }
 0x161   :  { %v2015_v33 = vunpack.i.l.s16 %v3190_v52  ;;  %1162 = vst [vmem:[#allocation2 + $0x34] sm:$0x1] %v1161_v51  ;;  %v1166_v58 = vld [vmem:[#allocation2 + $0x3c] sm:$0x1]  ;;  %v1613_v18 = vsel %vm2665_vm3, %v2042_v8, %v1612_v39  ;;  %v1472_v15 = vsel %vm985_vm9, %v1471_v14, %v1470_v61  ;;  %v1486_v55 = vsel %vm985_vm9, %v1485_v63, %v1484_v9  ;;  %v3077_v9 = vld [vmem:[%s3104_s4] ss:$0 sm:$0xff] }
 0x162   :  { %v1167_v1 = vsel %vm2259_vm6, %v1102_v57, %v1166_v58  ;;  %v1626_v21 = vunpack.c.l.b16 %v1609_v20  ;;  %v2016_v24 = vunpack.i.l.s16 %v968_v56  ;;  %v2024_v50 = vunpack.i.l.s16 %v976_v30 }
 0x163   :  { %1168 = vst [vmem:[#allocation2 + $0x3c] sm:$0x1] %v1167_v1  ;;  %v1475_v53 = vrot.slane %v2015_v33, 2  ;;  %v1489_v27 = vrot.slane %v2023_v46, 2  ;;  %v1627_v22 = vunpack.c.l.b16 %v1613_v18  ;;  %v1474_v34 = vsel %vm988_vm10, %v1473_v11, %v1472_v15 }
 0x164   :  { %v1488_v42 = vsel %vm988_vm10, %v1487_v19, %v1486_v55  ;;  %v1477_v37 = vrot.slane %v2016_v24, 1  ;;  %v1491_v7 = vrot.slane %v2024_v50, 1  ;;  %v1948_v6 = vor.u32 %v2071_v25, %v1947_v5 }
 0x165   :  { %v1632_v49 = vpack.c.b16 %v1627_v22, %v1626_v21  ;;  %v1476_v16 = vsel %vm991_vm11, %v1475_v53, %v1474_v34  ;;  %v1490_v62 = vsel %vm991_vm11, %v1489_v27, %v1488_v42  ;;  %v2043_v30 = vrot.slane %v1562_v0, 9 }
 0x166   :  { %v1478_v29 = vsel %vm994_vm12, %v1477_v37, %v1476_v16  ;;  %v1492_v38 = vsel %vm994_vm12, %v1491_v7, %v1490_v62  ;;  %v2044_v54 = vrot.slane %v1564_v45, 9  ;;  %vm1805_vm4 = vcmask 57344  }
 0x167   :  { %v1496_v14 = vpack.c.b16 %v1492_v38, %v1478_v29 }
 0x168   :  { %v1563_v36 = vld [vmem:[#allocation2 + $0x34] sm:$0x1] }
 0x169   :  { %v1616_v31 = vrot.slane %v1563_v36, 5 }
 0x16a   :  { %2055 = vmatmul.msk.bf16.gmra.mxu3 %vm1218_vm0, %v1632_v49  ;;  %v1565_v56 = vld [vmem:[#allocation2 + $0x3c] sm:$0x1] }
 0x16b   :  { %1960 = vmatmul.msk.bf16.gmra.mxu1 %vm1218_vm0, %v1948_v6  ;;  %v1620_v3 = vrot.slane %v1565_v56, 5  ;;  %v1617_v48 = vsel %vm2665_vm3, %v2043_v30, %v1616_v31 }
 0x16c   :  { %v1628_v17 = vunpack.c.l.b16 %v1617_v48 }
 0x16d   :  { %v1621_v10 = vsel %vm2665_vm3, %v2044_v54, %v1620_v3 }
 0x16e   :  { %2036 = vmatmul.msk.bf16.gmra.mxu2 %vm1218_vm0, %v1496_v14  ;;  %v1629_v13 = vunpack.c.l.b16 %v1621_v10  ;;  %v1530_v63 = vpop.f32.mrf.mxu2 }
 0x170   :  { %v1633_v40 = vpack.c.b16 %v1629_v13, %v1628_v17 }
 0x174   :  { %v1240_v35 = vpop.f32.mrf.mxu1 }
 0x175   :  { %v1531_v46 = vadd.f32 %v1530_v63, %v1240_v35 }
 0x176   :  { %v1532_v59 = vpop.f32.mrf.mxu2 }
 0x17a   :  { %2056 = vmatmul.msk.bf16.gmra.mxu3 %vm1218_vm0, %v1633_v40 }
 0x17c   :  { %v1242_v47 = vpop.f32.mrf.mxu1 }
 0x17d   :  { %v1533_v8 = vadd.f32 %v1532_v59, %v1242_v47 }
 0x187   :  { %v1667_v23 = vpop.f32.mrf.mxu3 }
 0x188   :  { %v1687_v1 = vadd.f32 %v1667_v23, %v1531_v46 }
 0x18a   :  { %v1699_v50 = vadd.f32 %v3077_v9, %v1687_v1 }
 0x18c   :  { %v1707_v16 = vmax.f32 %v1699_v50, 0.0 }
 0x18e   :  { %v1715_v36 = vrot.slane %v1707_v16, 4 }
 0x18f   :  { %v1669_v44 = vpop.f32.mrf.mxu3 }
 0x190   :  { %v1688_v57 = vadd.f32 %v1669_v44, %v1533_v8  ;;  %v1716_v17 = vadd.f32 %v1715_v36, %v1707_v16 }
 0x192   :  { %v1700_v58 = vadd.f32 %v3077_v9, %v1688_v57  ;;  %v1717_v44 = vrot.slane %v1716_v17, 2 }
 0x194   :  { %v1708_v21 = vmax.f32 %v1700_v58, 0.0 }
 0x196   :  { %v1721_v42 = vrot.slane %v1708_v21, 4 }
 0x198   :  { %v1722_v29 = vadd.f32 %v1721_v42, %v1708_v21 }
 0x19a   :  { %v1723_v54 = vrot.slane %v1722_v29, 2 }
 0x19c   :  { %v1724_v47 = vadd.f32 %v1723_v54, %v1722_v29 }
 0x1c7   :  { %v1245_v12 = vpop.f32.mrf.mxu1 }
 0x1cf   :  { %v1247_v4 = vpop.f32.mrf.mxu1 }
 0x1d1   :  { %v1535_v28 = vpop.f32.mrf.mxu2 }
 0x1d2   :  { %v1536_v39 = vadd.f32 %v1535_v28, %v1245_v12 }
 0x1d8   :  { %v1250_v32 = vpop.f32.mrf.mxu1 }
 0x1d9   :  { %v1537_v2 = vpop.f32.mrf.mxu2 }
 0x1da   :  { %v1538_v43 = vadd.f32 %v1537_v2, %v1247_v4 }
 0x1dd   :  { %v1672_v41 = vpop.f32.mrf.mxu3 }
 0x1de   :  { %v1689_v61 = vadd.f32 %v1672_v41, %v1536_v39 }
 0x1e0   :  { %v1252_v52 = vpop.f32.mrf.mxu1  ;;  %v1701_v19 = vadd.f32 %v3077_v9, %v1689_v61  ;;  %v1718_v61 = vadd.f32 %v1717_v44, %v1716_v17 }
 0x1e1   :  { %v1540_v60 = vpop.f32.mrf.mxu2 }
 0x1e2   :  { %v1541_v20 = vadd.f32 %v1540_v60, %v1250_v32  ;;  %v1709_v24 = vmax.f32 %v1701_v19, 0.0  ;;  %v1719_v1 = vrot.slane %v1718_v61, 1 }
 0x1e4   :  { %v1727_v37 = vrot.slane %v1709_v24, 4  ;;  %v1720_v42 = vadd.f32 %v1719_v1, %v1718_v61 }
 0x1e5   :  { %v1674_v26 = vpop.f32.mrf.mxu3 }
 0x1e6   :  { %v1690_v51 = vadd.f32 %v1674_v26, %v1538_v43  ;;  %v1728_v6 = vadd.f32 %v1727_v37, %v1709_v24  ;;  %v1725_v26 = vrot.slane %v1724_v47, 1 }
 0x1e8   :  { %v1702_v15 = vadd.f32 %v3077_v9, %v1690_v51  ;;  %v1255_v7 = vpop.f32.mrf.mxu1  ;;  %v1729_v10 = vrot.slane %v1728_v6, 2  ;;  %v1726_v46 = vadd.f32 %v1725_v26, %v1724_v47 }
 0x1e9   :  { %v1542_v18 = vpop.f32.mrf.mxu2 }
 0x1ea   :  { %v1710_v53 = vmax.f32 %v1702_v15, 0.0  ;;  %v1543_v27 = vadd.f32 %v1542_v18, %v1252_v52  ;;  %v1730_v12 = vadd.f32 %v1729_v10, %v1728_v6  ;;  %v2090_v15 = vld [vmem:[%s3105_s5] ss:$0 sm:$0xff]  ;;  %s2199_s5 = smov [#allocation9]  }
 0x1eb   :  { %v1767_v29 = vmul.f32 %v2090_v15, %v1720_v42  ;;  %s1812_s17 = sshll.u32 %s2199_s5, 4  ;;  %s1813_s17 = int_to_ptr.vmem [resolvable:$true] %s1812_s17 }
 0x1ec   :  { %v1733_v62 = vrot.slane %v1710_v53, 4  ;;  %v1731_v43 = vrot.slane %v1730_v12, 1 }
 0x1ed   :  { %v1677_v33 = vpop.f32.mrf.mxu3 }
 0x1ee   :  { %v1691_v11 = vadd.f32 %v1677_v33, %v1541_v20  ;;  %v1734_v45 = vadd.f32 %v1733_v62, %v1710_v53  ;;  %v1732_v18 = vadd.f32 %v1731_v43, %v1730_v12  ;;  %v1768_v53 = vmul.f32 %v2090_v15, %v1726_v46 }
 0x1f0   :  { %v1703_v55 = vadd.f32 %v3077_v9, %v1691_v11  ;;  %v1735_v13 = vrot.slane %v1734_v45, 2  ;;  %v1257_v63 = vpop.f32.mrf.mxu1  ;;  %v1783_v16 = vrot.slane %v1768_v53, 7 }
 0x1f1   :  { %v1545_v0 = vpop.f32.mrf.mxu2 }
 0x1f2   :  { %v1711_v22 = vmax.f32 %v1703_v55, 0.0  ;;  %v1546_v56 = vadd.f32 %v1545_v0, %v1255_v7  ;;  %v1736_v4 = vadd.f32 %v1735_v13, %v1734_v45 }
 0x1f4   :  { %v1739_v25 = vrot.slane %v1711_v22, 4  ;;  %v1737_v20 = vrot.slane %v1736_v4, 1 }
 0x1f5   :  { %v1679_v34 = vpop.f32.mrf.mxu3 }
 0x1f6   :  { %v1692_v49 = vadd.f32 %v1679_v34, %v1543_v27  ;;  %v1740_v14 = vadd.f32 %v1739_v25, %v1711_v22  ;;  %v1738_v55 = vadd.f32 %v1737_v20, %v1736_v4  ;;  %v1769_v34 = vmul.f32 %v2090_v15, %v1732_v18 }
 0x1f8   :  { %v1704_v5 = vadd.f32 %v3077_v9, %v1692_v49  ;;  %v1741_v35 = vrot.slane %v1740_v14, 2  ;;  %v1770_v49 = vmul.f32 %v2090_v15, %v1738_v55  ;;  %v1785_v25 = vrot.slane %v1769_v34, 6 }
 0x1f9   :  { %v1547_v28 = vpop.f32.mrf.mxu2 }
 0x1fa   :  { %v1712_v38 = vmax.f32 %v1704_v5, 0.0  ;;  %v1548_v2 = vadd.f32 %v1547_v28, %v1257_v63  ;;  %v1742_v32 = vadd.f32 %v1741_v35, %v1740_v14  ;;  %v1801_v35 = vlaneseq }
 0x1fc   :  { %v1745_v30 = vrot.slane %v1712_v38, 4  ;;  %v1743_v33 = vrot.slane %v1742_v32, 1  ;;  %v1802_v63 = vand.u32 127, %v1801_v35 }
 0x1fd   :  { %v1682_v31 = vpop.f32.mrf.mxu3 }
 0x1fe   :  { %v1746_v3 = vadd.f32 %v1745_v30, %v1712_v38  ;;  %v1693_v48 = vadd.f32 %v1682_v31, %v1546_v56  ;;  %v1744_v50 = vadd.f32 %v1743_v33, %v1742_v32  ;;  %v1787_v38 = vrot.slane %v1770_v49, 5 }
 0x1ff   :  { %v1784_v56 = vsel %vm1381_vm14, %v1783_v16, %v1767_v29 }
 0x200   :  { %v1705_v40 = vadd.f32 %v3077_v9, %v1693_v48  ;;  %v1747_v59 = vrot.slane %v1746_v3, 2  ;;  %v1771_v7 = vmul.f32 %v2090_v15, %v1744_v50  ;;  %v1786_v14 = vsel %vm979_vm7, %v1785_v25, %v1784_v56 }
 0x202   :  { %v1713_v23 = vmax.f32 %v1705_v40, 0.0  ;;  %v1748_v8 = vadd.f32 %v1747_v59, %v1746_v3  ;;  %v1789_v36 = vrot.slane %v1771_v7, 4  ;;  %v1788_v3 = vsel %vm982_vm8, %v1787_v38, %v1786_v14 }
 0x204   :  { %v1751_v41 = vrot.slane %v1713_v23, 4  ;;  %v1749_v58 = vrot.slane %v1748_v8, 1  ;;  %v1790_v48 = vsel %vm985_vm9, %v1789_v36, %v1788_v3 }
 0x205   :  { %v1684_v60 = vpop.f32.mrf.mxu3 }
 0x206   :  { %v1752_v39 = vadd.f32 %v1751_v41, %v1713_v23  ;;  %v1694_v57 = vadd.f32 %v1684_v60, %v1548_v2  ;;  %v1750_v27 = vadd.f32 %v1749_v58, %v1748_v8 }
 0x208   :  { %v1753_v51 = vrot.slane %v1752_v39, 2  ;;  %v1706_v52 = vadd.f32 %v3077_v9, %v1694_v57  ;;  %v1772_v5 = vmul.f32 %v2090_v15, %v1750_v27 }
 0x20a   :  { %v1754_v11 = vadd.f32 %v1753_v51, %v1752_v39  ;;  %v1714_v19 = vmax.f32 %v1706_v52, 0.0  ;;  %v1791_v30 = vrot.slane %v1772_v5, 3 }
 0x20c   :  { %v1755_v21 = vrot.slane %v1754_v11, 1  ;;  %v1757_v24 = vrot.slane %v1714_v19, 4  ;;  %v1792_v10 = vsel %vm988_vm10, %v1791_v30, %v1790_v48 }
 0x20e   :  { %v1758_v22 = vadd.f32 %v1757_v24, %v1714_v19  ;;  %v1756_v9 = vadd.f32 %v1755_v21, %v1754_v11 }
 0x210   :  { %v1759_v37 = vrot.slane %v1758_v22, 2  ;;  %v1773_v0 = vmul.f32 %v2090_v15, %v1756_v9 }
 0x212   :  { %v1760_v62 = vadd.f32 %v1759_v37, %v1758_v22  ;;  %v1793_v31 = vrot.slane %v1773_v0, 2 }
 0x214   :  { %v1761_v6 = vrot.slane %v1760_v62, 1  ;;  %v1794_v13 = vsel %vm991_vm11, %v1793_v31, %v1792_v10 }
 0x216   :  { %v1762_v45 = vadd.f32 %v1761_v6, %v1760_v62 }
 0x218   :  { %v1774_v54 = vmul.f32 %v2090_v15, %v1762_v45 }
 0x21a   :  { %v1795_v17 = vrot.slane %v1774_v54, 1 }
 0x21c   :  { %v1796_v40 = vsel %vm994_vm12, %v1795_v17, %v1794_v13 }
 0x21d   :  { %1798 = vadd.xlane.f32.xlu0 %v1796_v40 }
 0x290   :  { %v1799_v47 = vpop.xlane.xlu0 %1798 }
 0x291   :  { %v1803_v59 = vperm.slane %v1799_v47, %v1802_v63 }
 0x293   :  { %1806 = vst.msk [vmem:[#allocation9] sm:$0x1] %vm1805_vm4, %v1803_v59 }
 0x294   :  { %1817 = dma.vmem_to_hbm [thread:$0]  %s1813_s17, 16, %s1815_s20, [#allocation5]  }
 0x295   :  { %2192 = dma.done.wait [#allocation5], 16  }
 0x296   :  { %2193 = vsyncadd [#allocation5], 4294967280 }
 0x297   :  { %1822 = vsyncpa [#allocation4], 1 }
 0x298   :  { %1823 = vsyncpa [#allocation7], 1 }
 0x299   :  { %1824 = vsyncpa [#allocation5], 1 }

</bundles_post_ra>
